<compile_context>
chip_gen: v5e
topology: v5e:2x2
jax: 0.10.0
libtpu: 0.0.40
codegen_flags: <defaults>
</compile_context>

<pallas_src>
import math
import functools

import jax
import jax.numpy as jnp
from jax import lax
from jax.experimental import pallas as pl
from jax.experimental.pallas import tpu as pltpu


def mha_kernel(x_ref, w_ref, b_ref, o_ref, *, batch_block, heads_per_block,
               head_dim, compute_dtype, approx_recip):
    """One grid step == one (head group, batch block).

    x_ref : (Bb, T, E)      activations for this batch block
    w_ref : (E, 3*bw)       fused [wq_g | wk_g | wv_g] columns for this head group
    b_ref : (1, 3*bw)       fused bias slice (f32)
    o_ref : (Bb, T, bw)     output columns for this head group
    """
    Bb = batch_block
    T = x_ref.shape[1]
    E = x_ref.shape[2]
    bw = heads_per_block * head_dim

    # One big projection GEMM: M = Bb*T rows feed the MXU, f32 accumulation,
    # f32 bias add, then a single cast of the whole block to the compute dtype.
    x = x_ref[...].astype(compute_dtype).reshape(Bb * T, E)
    qkv = jnp.dot(x, w_ref[...], preferred_element_type=jnp.float32) + b_ref[...]
    qkv = qkv.astype(compute_dtype)                              # (Bb*T, 3*bw)

    # Causal mask: strictly upper triangle (query index < key index) masked out.
    row = lax.broadcasted_iota(jnp.int32, (T, T), 0)             # query index
    col = lax.broadcasted_iota(jnp.int32, (T, T), 1)             # key index
    keep = row >= col
    neg_big = jnp.float32(-1e30)                                 # finite sentinel, NaN-safe

    for bb in range(Bb):                                         # Bb is small & static
        qkv_b = qkv[bb * T:(bb + 1) * T, :]                      # (T, 3*bw), static slice
        outs = []
        for h in range(heads_per_block):                         # hb == 1 on aligned shapes
            lo = h * head_dim
            qh = qkv_b[:, lo:lo + head_dim]                      # (T, Dh), already scaled
            kh = qkv_b[:, bw + lo:bw + lo + head_dim]
            vh = qkv_b[:, 2 * bw + lo:2 * bw + lo + head_dim]

            # scores[q_idx, k_idx] = <q_h[q_idx], k_h[k_idx]>  (scale folded into wq/bq)
            s = lax.dot_general(qh, kh, (((1,), (1,)), ((), ())),
                                preferred_element_type=jnp.float32)
            s = jnp.where(keep, s, neg_big)

            # softmax over the QUERY axis (axis 0) -- matches torch.softmax(dim=dims-2).
            m = jnp.max(s, axis=0, keepdims=True)
            e = jnp.exp(s - m)
            inv = pl.reciprocal(jnp.sum(e, axis=0, keepdims=True), approx=approx_recip)
            p = (e * inv).astype(compute_dtype)

            outs.append(jnp.dot(p, vh, preferred_element_type=jnp.float32))

        out_b = outs[0] if len(outs) == 1 else jnp.concatenate(outs, axis=-1)
        o_ref[bb] = out_b.astype(o_ref.dtype)                    # one lane-dense store


def _heads_per_block(num_heads, head_dim):
    """Smallest head group whose column width is a multiple of 128 (lane-dense);
    fall back to all heads (block width == E == full dim, always legal)."""
    for cand in range(1, num_heads + 1):
        if num_heads % cand == 0 and (cand * head_dim) % 128 == 0:
            return cand
    return num_heads


def _pick_batch_block(B, T, E, x_itemsize, target_rows=256, cap_bytes=4 << 20):
    """Smallest divisor of B whose Bb*T reaches the MXU row target, capped by a
    per-block VMEM budget; otherwise the largest divisor under the cap."""
    best = 1
    for d in range(1, B + 1):
        if B % d != 0:
            continue
        fits = d * T * E * x_itemsize <= cap_bytes
        if fits:
            best = d
            if d * T >= target_rows:
                return d
    return best


def _vmem_budget(Bb, T, E, bw, x_item, w_item, out_item):
    x_b = 2 * Bb * T * E * x_item                 # double-buffered x block
    w_b = 2 * E * 3 * bw * w_item                 # double-buffered fused weight block
    bias_b = 2 * 3 * bw * 4
    o_b = 2 * Bb * T * bw * out_item
    inter = Bb * T * 3 * bw * (4 + w_item) + 4 * T * T * 4
    total = x_b + w_b + bias_b + o_b + inter
    return int(min(64 << 20, max(32 << 20, 2 * total)))


def mha_forward(x, params, *, num_heads, compute_dtype=jnp.bfloat16):
    # TODO(synk): the module's optional padding `mask` (multiplied into the attention
    # matrix post-softmax) is not implemented; this is the default mask=None path.
    B, T, E = x.shape
    assert E % num_heads == 0, "embedding_size must be divisible by num_heads"
    Dh = E // num_heads
    hb = _heads_per_block(num_heads, Dh)
    n_groups = num_heads // hb
    bw = hb * Dh                                                # per-group column width
    scale = 1.0 / math.sqrt(E)                                  # module divides by sqrt(embedding_size)

    Bb = _pick_batch_block(B, T, E, x.dtype.itemsize)
    n_bblocks = B // Bb

    # Fold the softmax scale into wq/bq (exact: q only feeds the scores), cast
    # weights to the MXU compute dtype; biases stay f32 (added post-accumulation).
    wq = (params["wq"] * scale).astype(compute_dtype)
    wk = params["wk"].astype(compute_dtype)
    wv = params["wv"].astype(compute_dtype)
    bq = (params["bq"] * scale).astype(jnp.float32)
    bk = params["bk"].astype(jnp.float32)
    bv = params["bv"].astype(jnp.float32)

    # Fuse [Q|K|V] per head-group: column slice g of the fused weight is
    # [wq_g | wk_g | wv_g], so each grid step needs ONE weight DMA + ONE GEMM.
    w_fused = jnp.concatenate(
        [wq.reshape(E, n_groups, bw),
         wk.reshape(E, n_groups, bw),
         wv.reshape(E, n_groups, bw)], axis=2).reshape(E, 3 * E)
    b_fused = jnp.concatenate(
        [bq.reshape(1, n_groups, bw),
         bk.reshape(1, n_groups, bw),
         bv.reshape(1, n_groups, bw)], axis=2).reshape(1, 3 * E)

    kernel = functools.partial(
        mha_kernel, batch_block=Bb, heads_per_block=hb, head_dim=Dh,
        compute_dtype=compute_dtype,
        approx_recip=(compute_dtype != jnp.float32))

    # Grid = (head_group, batch_block): weight block index is constant across the
    # inner batch axis -> weights stay VMEM-resident instead of re-streaming per
    # batch element; x/output blocks pipeline over batch.
    x_spec = pl.BlockSpec((Bb, T, E), lambda g, b: (b, 0, 0))
    w_spec = pl.BlockSpec((E, 3 * bw), lambda g, b: (0, g))
    b_spec = pl.BlockSpec((1, 3 * bw), lambda g, b: (0, g))
    o_spec = pl.BlockSpec((Bb, T, bw), lambda g, b: (b, 0, g))

    vmem_bytes = _vmem_budget(Bb, T, E, bw,
                              x.dtype.itemsize,
                              jnp.dtype(compute_dtype).itemsize,
                              x.dtype.itemsize)

    return pl.pallas_call(
        kernel,
        out_shape=jax.ShapeDtypeStruct((B, T, E), x.dtype),
        grid_spec=pltpu.PrefetchScalarGridSpec(
            num_scalar_prefetch=0,
            grid=(n_groups, n_bblocks),
            in_specs=[x_spec, w_spec, b_spec],
            out_specs=o_spec,
        ),
        compiler_params=pltpu.CompilerParams(
            dimension_semantics=("parallel", "parallel"),
            vmem_limit_bytes=vmem_bytes),
    )(x, w_fused, b_fused)


# ---------------- pure-JAX reference (mirrors the PyTorch forward, f32) ----------------
def mha_ref(x, params, *, num_heads):
    B, T, E = x.shape
    H = num_heads
    Dh = E // H
    q = x @ params["wq"] + params["bq"]
    k = x @ params["wk"] + params["bk"]
    v = x @ params["wv"] + params["bv"]

    def split(t):                                              # (B,T,E) -> (B,H,T,Dh)
        return t.reshape(B, T, H, Dh).transpose(0, 2, 1, 3)

    q, k, v = split(q), split(k), split(v)
    s = jnp.einsum("bhqd,bhkd->bhqk", q, k) / math.sqrt(E)
    row = jnp.arange(T)[:, None]
    col = jnp.arange(T)[None, :]
    s = jnp.where(row < col, -jnp.inf, s)
    a = jax.nn.softmax(s, axis=2)                              # softmax over QUERY axis
    vals = jnp.einsum("bhqk,bhkd->bhqd", a, v)
    return vals.transpose(0, 2, 1, 3).reshape(B, T, E)


def init_params(key, *, E, lora_rank):
    ks = jax.random.split(key, 12)

    def lin(k, fin, fout):
        bound = 1.0 / math.sqrt(fin)
        return jax.random.uniform(k, (fin, fout), jnp.float32, -bound, bound)

    def vec(k, fin, n):
        bound = 1.0 / math.sqrt(fin)
        return jax.random.uniform(k, (1, n), jnp.float32, -bound, bound)

    def lora(ka, kb):
        if lora_rank is None:
            return jnp.zeros((E, E), jnp.float32)
        return lin(ka, E, lora_rank) @ lin(kb, lora_rank, E)   # exact B(A(x)) fold

    return {
        "wq": lin(ks[0], E, E) + lora(ks[1], ks[2]),  "bq": vec(ks[3], E, E),
        "wk": lin(ks[4], E, E) + lora(ks[5], ks[6]),  "bk": vec(ks[7], E, E),
        "wv": lin(ks[8], E, E) + lora(ks[9], ks[10]), "bv": vec(ks[11], E, E),
    }


if __name__ == "__main__":
    configs = [
        # lane-aligned production-style shape: Dh=128 -> per-head-group tiled path
        dict(B=2, T=64, E=256, H=2, rank=4),
        # tiny / unaligned shape (Dh=8): exercises the whole-E fallback path
        dict(B=2, T=8, E=32, H=4, rank=4),
    ]

    key = jax.random.PRNGKey(0)
    for cfg in configs:
        key, kx, kp = jax.random.split(key, 3)
        x = jax.random.normal(kx, (cfg["B"], cfg["T"], cfg["E"]), jnp.float32)
        params = init_params(kp, E=cfg["E"], lora_rank=cfg["rank"])

        ref = mha_ref(x, params, num_heads=cfg["H"])

        out_f32 = jax.block_until_ready(
            mha_forward(x, params, num_heads=cfg["H"], compute_dtype=jnp.float32))
        assert out_f32.shape == ref.shape
        assert jnp.allclose(out_f32, ref, atol=1e-4, rtol=1e-4), "f32 kernel mismatch"

        out_bf16 = jax.block_until_ready(
            mha_forward(x, params, num_heads=cfg["H"], compute_dtype=jnp.bfloat16))
        assert out_bf16.shape == ref.shape
        assert jnp.allclose(out_bf16, ref, atol=2e-2, rtol=2e-2), "bf16 kernel mismatch"

    print("KERNEL_OK")
</pallas_src>

<mosaic_0001>
module attributes {stable_mosaic.version = 11 : i64} {
  func.func @mha_kernel(%arg0: i32, %arg1: i32, %arg2: memref<2x64x256xf32, #tpu.memory_space<vmem>>, %arg3: memref<256x384xf32, #tpu.memory_space<vmem>>, %arg4: memref<1x384xf32, #tpu.memory_space<vmem>>, %arg5: memref<2x64x128xf32, #tpu.memory_space<vmem>>) attributes {dimension_semantics = [#tpu.dimension_semantics<parallel>, #tpu.dimension_semantics<parallel>], iteration_bounds = array<i64: 2, 1>, scalar_prefetch = 0 : i64, scratch_operands = 0 : i64, tpu.core_type = #tpu.core_type<tc>, window_params = [{transform_indices = @transform_0, window_bounds = array<i64: 2, 64, 256>}, {transform_indices = @transform_1, window_bounds = array<i64: 256, 384>}, {transform_indices = @transform_2, window_bounds = array<i64: 1, 384>}, {transform_indices = @transform_3, window_bounds = array<i64: 2, 64, 128>}]} {
    %c0 = arith.constant 0 : index
    %c0_0 = arith.constant 0 : index
    %c0_1 = arith.constant 0 : index
    %0 = vector.load %arg2[%c0, %c0_0, %c0_1] : memref<2x64x256xf32, #tpu.memory_space<vmem>>, vector<2x64x256xf32>
    %1 = vector.shape_cast %0 : vector<2x64x256xf32> to vector<128x256xf32>
    %c0_2 = arith.constant 0 : index
    %c0_3 = arith.constant 0 : index
    %2 = vector.load %arg3[%c0_2, %c0_3] : memref<256x384xf32, #tpu.memory_space<vmem>>, vector<256x384xf32>
    %cst = arith.constant dense<0.000000e+00> : vector<128x384xf32>
    %3 = tpu.matmul %1, %2, %cst {dimension_numbers = #tpu.dot_dimension_numbers<[1], [0], [0], [1], [0, 0, 1, 1], [], []>} : vector<128x256xf32>, vector<256x384xf32>, vector<128x384xf32> -> vector<128x384xf32>
    %c0_4 = arith.constant 0 : index
    %c0_5 = arith.constant 0 : index
    %4 = vector.load %arg4[%c0_4, %c0_5] : memref<1x384xf32, #tpu.memory_space<vmem>>, vector<1x384xf32>
    %5 = vector.broadcast %4 : vector<1x384xf32> to vector<128x384xf32>
    %6 = arith.addf %3, %5 : vector<128x384xf32>
    %7 = tpu.iota {dimensions = array<i32: 0>} : vector<64x64xi32>
    %8 = tpu.iota {dimensions = array<i32: 1>} : vector<64x64xi32>
    %9 = arith.cmpi sge, %7, %8 : vector<64x64xi32>
    %10 = vector.extract_strided_slice %6 {offsets = [0, 0], sizes = [64, 384], strides = [1, 1]} : vector<128x384xf32> to vector<64x384xf32>
    %11 = vector.extract_strided_slice %10 {offsets = [0, 0], sizes = [64, 128], strides = [1, 1]} : vector<64x384xf32> to vector<64x128xf32>
    %12 = vector.extract_strided_slice %10 {offsets = [0, 128], sizes = [64, 128], strides = [1, 1]} : vector<64x384xf32> to vector<64x128xf32>
    %13 = vector.extract_strided_slice %10 {offsets = [0, 256], sizes = [64, 128], strides = [1, 1]} : vector<64x384xf32> to vector<64x128xf32>
    %cst_6 = arith.constant dense<0.000000e+00> : vector<64x64xf32>
    %14 = tpu.matmul %11, %12, %cst_6 {dimension_numbers = #tpu.dot_dimension_numbers<[1], [1], [0], [0], [0, 0, 1, 0], [], []>} : vector<64x128xf32>, vector<64x128xf32>, vector<64x64xf32> -> vector<64x64xf32>
    %cst_7 = arith.constant -1.000000e+30 : f32
    %15 = vector.broadcast %cst_7 : f32 to vector<64x64xf32>
    %16 = arith.select %9, %14, %15 : vector<64x64xi1>, vector<64x64xf32>
    %cst_8 = arith.constant dense<0xFF800000> : vector<64xf32>
    %17 = vector.multi_reduction <maximumf>, %16, %cst_8 [0] : vector<64x64xf32> to vector<64xf32>
    %18 = vector.shape_cast %17 : vector<64xf32> to vector<1x64xf32>
    %19 = vector.broadcast %18 : vector<1x64xf32> to vector<64x64xf32>
    %20 = arith.subf %16, %19 : vector<64x64xf32>
    %21 = math.exp %20 : vector<64x64xf32>
    %cst_9 = arith.constant dense<0.000000e+00> : vector<64xf32>
    %22 = vector.multi_reduction <add>, %21, %cst_9 [0] : vector<64x64xf32> to vector<64xf32>
    %23 = vector.shape_cast %22 : vector<64xf32> to vector<1x64xf32>
    %24 = tpu.reciprocal %23 : vector<1x64xf32> -> vector<1x64xf32>
    %25 = vector.broadcast %24 : vector<1x64xf32> to vector<64x64xf32>
    %26 = arith.mulf %21, %25 : vector<64x64xf32>
    %cst_10 = arith.constant dense<0.000000e+00> : vector<64x128xf32>
    %27 = tpu.matmul %26, %13, %cst_10 {dimension_numbers = #tpu.dot_dimension_numbers<[1], [0], [0], [1], [0, 0, 1, 1], [], []>} : vector<64x64xf32>, vector<64x128xf32>, vector<64x128xf32> -> vector<64x128xf32>
    %c0_11 = arith.constant 0 : index
    %c0_12 = arith.constant 0 : index
    %c0_13 = arith.constant 0 : index
    %28 = vector.load %arg5[%c0_11, %c0_12, %c0_13] : memref<2x64x128xf32, #tpu.memory_space<vmem>>, vector<1x64x128xf32>
    %29 = vector.shape_cast %28 : vector<1x64x128xf32> to vector<64x128xf32>
    %30 = vector.shape_cast %27 : vector<64x128xf32> to vector<1x64x128xf32>
    tpu.vector_store %arg5[%c0_11, %c0_12, %c0_13], %30 {strides = array<i32>} : memref<2x64x128xf32, #tpu.memory_space<vmem>>, vector<1x64x128xf32>,
    %31 = vector.extract_strided_slice %6 {offsets = [64, 0], sizes = [64, 384], strides = [1, 1]} : vector<128x384xf32> to vector<64x384xf32>
    %32 = vector.extract_strided_slice %31 {offsets = [0, 0], sizes = [64, 128], strides = [1, 1]} : vector<64x384xf32> to vector<64x128xf32>
    %33 = vector.extract_strided_slice %31 {offsets = [0, 128], sizes = [64, 128], strides = [1, 1]} : vector<64x384xf32> to vector<64x128xf32>
    %34 = vector.extract_strided_slice %31 {offsets = [0, 256], sizes = [64, 128], strides = [1, 1]} : vector<64x384xf32> to vector<64x128xf32>
    %cst_14 = arith.constant dense<0.000000e+00> : vector<64x64xf32>
    %35 = tpu.matmul %32, %33, %cst_14 {dimension_numbers = #tpu.dot_dimension_numbers<[1], [1], [0], [0], [0, 0, 1, 0], [], []>} : vector<64x128xf32>, vector<64x128xf32>, vector<64x64xf32> -> vector<64x64xf32>
    %cst_15 = arith.constant -1.000000e+30 : f32
    %36 = vector.broadcast %cst_15 : f32 to vector<64x64xf32>
    %37 = arith.select %9, %35, %36 : vector<64x64xi1>, vector<64x64xf32>
    %cst_16 = arith.constant dense<0xFF800000> : vector<64xf32>
    %38 = vector.multi_reduction <maximumf>, %37, %cst_16 [0] : vector<64x64xf32> to vector<64xf32>
    %39 = vector.shape_cast %38 : vector<64xf32> to vector<1x64xf32>
    %40 = vector.broadcast %39 : vector<1x64xf32> to vector<64x64xf32>
    %41 = arith.subf %37, %40 : vector<64x64xf32>
    %42 = math.exp %41 : vector<64x64xf32>
    %cst_17 = arith.constant dense<0.000000e+00> : vector<64xf32>
    %43 = vector.multi_reduction <add>, %42, %cst_17 [0] : vector<64x64xf32> to vector<64xf32>
    %44 = vector.shape_cast %43 : vector<64xf32> to vector<1x64xf32>
    %45 = tpu.reciprocal %44 : vector<1x64xf32> -> vector<1x64xf32>
    %46 = vector.broadcast %45 : vector<1x64xf32> to vector<64x64xf32>
    %47 = arith.mulf %42, %46 : vector<64x64xf32>
    %cst_18 = arith.constant dense<0.000000e+00> : vector<64x128xf32>
    %48 = tpu.matmul %47, %34, %cst_18 {dimension_numbers = #tpu.dot_dimension_numbers<[1], [0], [0], [1], [0, 0, 1, 1], [], []>} : vector<64x64xf32>, vector<64x128xf32>, vector<64x128xf32> -> vector<64x128xf32>
    %c1 = arith.constant 1 : index
    %c0_19 = arith.constant 0 : index
    %c0_20 = arith.constant 0 : index
    %49 = vector.load %arg5[%c1, %c0_19, %c0_20] : memref<2x64x128xf32, #tpu.memory_space<vmem>>, vector<1x64x128xf32>
    %50 = vector.shape_cast %49 : vector<1x64x128xf32> to vector<64x128xf32>
    %51 = vector.shape_cast %48 : vector<64x128xf32> to vector<1x64x128xf32>
    tpu.vector_store %arg5[%c1, %c0_19, %c0_20], %51 {strides = array<i32>} : memref<2x64x128xf32, #tpu.memory_space<vmem>>, vector<1x64x128xf32>,
    return
  }
  func.func @transform_0(%arg0: i32, %arg1: i32) -> (i32, i32, i32) {
    %c0_i32 = arith.constant 0 : i32
    %c0_i32_0 = arith.constant 0 : i32
    %c0_i32_1 = arith.constant 0 : i32
    return %arg1, %c0_i32, %c0_i32_0 : i32, i32, i32
  }
  func.func @transform_1(%arg0: i32, %arg1: i32) -> (i32, i32) {
    %c0_i32 = arith.constant 0 : i32
    %c0_i32_0 = arith.constant 0 : i32
    return %c0_i32, %arg0 : i32, i32
  }
  func.func @transform_2(%arg0: i32, %arg1: i32) -> (i32, i32) {
    %c0_i32 = arith.constant 0 : i32
    %c0_i32_0 = arith.constant 0 : i32
    return %c0_i32, %arg0 : i32, i32
  }
  func.func @transform_3(%arg0: i32, %arg1: i32) -> (i32, i32, i32) {
    %c0_i32 = arith.constant 0 : i32
    %c0_i32_0 = arith.constant 0 : i32
    return %arg1, %c0_i32, %arg0 : i32, i32, i32
  }
}

</mosaic_0001>

<bundles_post_ra>
// kernel: tpu_custom_call.1
= control target key start
LH: loop header
LB: loop body
LE: loop exit
PB: predicated region body
PF: predicated region fallthrough
CT: control target
= control target key end

     0   :  { %s2582_s0 = inlined_call_operand.hbm [shape: f32[2,64,256], index: 0, kind: input, shape index: {}]   ;;  %s2583_s1 = inlined_call_operand.hbm [shape: f32[256,768], index: 1, kind: input, shape index: {}]   ;;  %s2584_s2 = inlined_call_operand.hbm [shape: f32[1,768], index: 2, kind: input, shape index: {}]   ;;  %s2585_s3 = inlined_call_operand.hbm [shape: f32[2,64,256], index: 3, kind: output, shape index: {}]  }
   0x1   :  { %2586 = sst [smem:[#allocation12_spill]] %s2582_s0 }
   0x2   :  { %2587 = sst [smem:[#allocation13_spill]] %s2583_s1 }
   0x3   :  { %8 = vsyncpa [#allocation3], 0 }
   0x4   :  { %9 = vsyncpa [#allocation6], 0 }
   0x5   :  { %11 = vsyncpa [#allocation6 + $0x1], 0 }
   0x6   :  { %12 = vsyncpa [#allocation4], 0 }
   0x7   :  { %14 = vsyncpa [#allocation4 + $0x1], 0  ;;  %s1744_s12 = smov 0   ;;  %s1746_s13 = smov 0  }
   0x8   :  { %s1748_s14 = smov 0   ;;  %s1750_s15 = smov 0  }
   0x9   :  { %s1752_s16 = smov 0   ;;  %s1754_s17 = smov 0  }
   0xa LB: > { %s32_s18 = sadd.s32 1, %s1709_s16  ;;  %s65_s19 = sadd.s32 1, %s1701_s14  ;;  %s1713_s17 = sphi %s1754_s17, %s20_s17   ;;  %s1709_s16 = sphi %s1752_s16, %s2599_s16   ;;  %s1705_s15 = sphi %s1750_s15, %s2598_s15   ;;  %s1701_s14 = sphi %s1748_s14, %s2597_s14   ;;  %s1697_s13 = sphi %s1746_s13, %s2596_s13   ;;  %s1693_s12 = sphi %s1744_s12, %s2595_s12  }
   0xb   : > { %p34_p0 = scmp.ge.s32.totalorder %s32_s18, 2  ;;  %p72_p1 = scmp.ne.s32.totalorder %s1701_s14, %s1697_s13 }
   0xc   : > { %p73_p2 = scmp.eq.s32.totalorder %s1713_s17, 0  ;;  %p1377_p3 = scmp.ge.s32.totalorder %s1713_s17, 2 }
   0xd   : > { %s2601_s18 = smov (%p34_p0, %s32_s18), 0  ;;  %p1441_p5 = scmp.lt.s32.totalorder %s1713_s17, 2 }
   0xe   : > { %p74_p4 = por %p73_p2, %p72_p1  ;;  %s62_s20 = ssub.s32 %s1709_s16, %s2601_s18 }
   0xf   : > { %s174_s21 = sand.u32 1, %s1713_s17   ;;  %p63_p6 = scmp.eq.s32.totalorder %s62_s20, 0 }
  0x10   : > { %s176_s22 = sand.u32 1, %s1701_s14   ;;  %s1410_s23 = smul.u32 24, %s1709_s16 }
  0x11   : > { %s1792_s24 = scalar_select %p63_p6, %s1701_s14, %s65_s19  }
  0x12   : > { %s1411_s25 = smul.u32 768, %s176_s22  ;;  %s2588_s1 = sld [smem:[#allocation13_spill]] }
  0x13   : > { %p1799_p7 = pnand %p1441_p5, %p74_p4  ;;  %s1803_s6 = scalar_lea.sflag [#allocation6], %s174_s21 }
  0x14   : > { %s178_s4 = scalar_lea.vmem [#allocation5], %s1411_s25  ;;  %s1715_s7 = smov 768  }
  0x15   : > { %s186_s5 = sshll.u32 %s178_s4, 4  ;;  %s1716_s8 = smov 384   ;;  %s187_s5 = int_to_ptr.vmem [resolvable:$true] %s186_s5 }
  0x16   : > { %s1717_s9 = smov 24   ;;  %s1809_s10 = sadd.s32 4294967295, %s1713_s17  }
  0x17   : > { %s1374_s11 = sadd.s32 4294967294, %s1713_s17   ;;  %p78_p8 = scmp.ne.s32.totalorder %s1697_s13, %s1693_s12 }
  0x18   : > { %s183_s28 = scalar_lea.hbm %s2588_s1, %s1410_s23  ;;  %p79_p9 = scmp.eq.s32.totalorder %s1809_s10, 0 }
  0x19   : > { %s184_s29 = sshll.u32 %s183_s28, 4  ;;  %p130_p10 = scmp.eq.s32.totalorder %s1809_s10, 1  ;;  %s185_s29 = int_to_ptr.hbm [resolvable:$true] %s184_s29 }
  0x1a   : > { %1432 = dma.hbm_to_vmem [thread:$0]  (!%p1799_p7), %s185_s29, 12288, %s187_s5, %s1803_s6, %s1715_s7, %s1716_s8, %s1717_s9  }
  0x1b   : > { %p136_p11 = scmp.eq.s32.totalorder %s1374_s11, 1  ;;  %p1818_p12 = por %p79_p9, %p78_p8 }
  0x1c   : > { %p1375_p13 = scmp.ge.s32.totalorder %s1713_s17, 1  ;;  %p1826_p0 = por %p130_p10, %p72_p1 }
  0x1d   : > { %p1830_p2 = por %p136_p11, %p78_p8  ;;  %p143_p4 = scmp.lt.s32.totalorder %s1713_s17, 3 }
  0x1e   : > { %s2593_s0 = sld [smem:[#allocation12_spill]]  ;;  %s1718_s28 = smov [#allocation2]  }
  0x1f   : > { %p1838_p5 = pnand %p1375_p13, %p143_p4  ;;  %s160_s29 = sshll.u32 %s1718_s28, 4  ;;  %s161_s29 = int_to_ptr.vmem [resolvable:$true] %s160_s29 }
  0x20   : > { %s1412_s4 = smul.u32 3, %s176_s22  ;;  %s1719_s11 = smov 256  }
  0x21   : > { %p1425_p1 = pneg %p1838_p5  ;;  %s201_s5 = smul.u32 3, %s1709_s16 }
  0x22   : > { %s1720_s23 = smov 16  }
  0x23   : > { %p1426_p6 = pnand %p1425_p1, %p79_p9  ;;  %s204_s9 = scalar_lea.hbm %s2584_s2, %s201_s5 }
  0x24   : > { %s158_s26 = sshll.u32 %s2593_s0, 4  ;;  %s206_s25 = sshll.u32 %s204_s9, 4  ;;  %s159_s26 = int_to_ptr.hbm [resolvable:$true] %s158_s26  ;;  %s207_s25 = int_to_ptr.hbm [resolvable:$true] %s206_s25 }
  0x25   : > { %1428 = dma.hbm_to_vmem [thread:$0]  (!%p1426_p6), %s159_s26, 4096, %s161_s29, [#allocation3], %s1719_s11, %s1719_s11, %s1720_s23  }
  0x26   : > { %s200_s0 = scalar_lea.vmem [#allocation7], %s1412_s4  ;;  %217 = sbr.rel (%p1838_p5) target bundleno = 827 (0x33b), region = 32 }
  0x27   : > { %s208_s1 = sshll.u32 %s200_s0, 4  ;;  %s209_s1 = int_to_ptr.vmem [resolvable:$true] %s208_s1 }
  0x28   : > { %1435 = dma.hbm_to_vmem [thread:$0]  (!%p1799_p7), %s207_s25, 48, %s209_s1, %s1803_s6  }
  0x2b   : > { %1680 = dma.done.wait (%p79_p9), [#allocation3], 4096  }
  0x2c   : > { %1682 = vsyncadd (%p79_p9), [#allocation3], 4294963200  ;;  %s224_s22 = sand.u32 1, %s1809_s10   ;;  %s1863_s26 = sand.u32 1, %s1697_s13  }
  0x2d   : > { %s1413_s0 = smul.u32 768, %s1863_s26  ;;  %s225_s28 = scalar_lea.sflag [#allocation6], %s224_s22 }
  0x2f   : > { %s1866_s30 = scalar_lea.vmem [#allocation5], %s1413_s0 }
  0x30   : > { %1684 = dma.done.wait (%p1818_p12), %s225_s28, 12336  }
  0x31   : > { %1686 = vsyncadd (%p1818_p12), %s225_s28, 4294954960  ;;  %v349_v0 = vld [vmem:[%s1866_s30 + $0x170] sm:$0xff]  ;;  %v346_v1 = vld [vmem:[%s1866_s30 + $0x158] sm:$0xff]  ;;  %s1414_s1 = smul.u32 3, %s1863_s26  ;;  %vm865_vm5 = vcmask 523264   ;;  %s1381_s10 = sshll.u32 %s1863_s26, 7 }
  0x32   : > { %v397_v2 = vld [vmem:[%s1866_s30 + $0x2f0] sm:$0xff]  ;;  %537 = vmatpush.msra.mxu2 %v349_v0  ;;  %v394_v3 = vld [vmem:[%s1866_s30 + $0x2d8] sm:$0xff]  ;;  %v343_v4 = vld [vmem:[%s1866_s30 + $0x140] sm:$0xff]  ;;  %s2525_s19 = scalar_lea.vmem [#allocation8], %s1381_s10  ;;  %s1407_s27 = sshll.u32 %s1705_s15, 3 }
  0x33   : > { %602 = vmatpush.msra.mxu3 %v397_v2  ;;  %v391_v5 = vld [vmem:[%s1866_s30 + $0x2c0] sm:$0xff]  ;;  %v340_v6 = vld [vmem:[%s1866_s30 + $0x128] sm:$0xff]  ;;  %v337_v8 = vld [vmem:[%s1866_s30 + $0x110] sm:$0xff]  ;;  %s238_s6 = scalar_lea.vmem [#allocation7], %s1414_s1  ;;  %s1252_s5 = scalar_lea.hbm %s2585_s3, %s1407_s27 }
  0x34   : > { %538 = vmatpush.msra.mxu2 %v346_v1  ;;  %v388_v7 = vld [vmem:[%s1866_s30 + $0x2a8] sm:$0xff]  ;;  %v385_v9 = vld [vmem:[%s1866_s30 + $0x290] sm:$0xff]  ;;  %v334_v10 = vld [vmem:[%s1866_s30 + $0xf8] sm:$0xff]  ;;  %s1253_s7 = sshll.u32 %s2525_s19, 4  ;;  %s1255_s8 = sshll.u32 %s1252_s5, 4  ;;  %s1254_s7 = int_to_ptr.vmem [resolvable:$true] %s1253_s7  ;;  %s1256_s8 = int_to_ptr.hbm [resolvable:$true] %s1255_s8 }
  0x35   : > { %603 = vmatpush.msra.mxu3 %v394_v3  ;;  %v382_v11 = vld [vmem:[%s1866_s30 + $0x278] sm:$0xff]  ;;  %v331_v12 = vld [vmem:[%s1866_s30 + $0xe0] sm:$0xff]  ;;  %v328_v14 = vld [vmem:[%s1866_s30 + $0xc8] sm:$0xff]  ;;  %s1239_s9 = scalar_lea.sflag [#allocation4], %s1863_s26  ;;  %s1641_s11 = sshra.s32 %s1256_s8, 4  ;;  %s1642_s11 = int_to_ptr.hbm [resolvable:$true] %s1641_s11 }
  0x36   : > { %539 = vmatpush.msra.mxu2 %v343_v4  ;;  %v379_v13 = vld [vmem:[%s1866_s30 + $0x260] sm:$0xff]  ;;  %v376_v15 = vld [vmem:[%s1866_s30 + $0x248] sm:$0xff]  ;;  %v325_v16 = vld [vmem:[%s1866_s30 + $0xb0] sm:$0xff]  ;;  %s1643_s23 = scalar_lea.hbm %s1642_s11, 128  ;;  %s1647_s22 = scalar_lea.hbm %s2585_s3, 256 }
  0x37   : > { %604 = vmatpush.msra.mxu3 %v391_v5  ;;  %v373_v17 = vld [vmem:[%s1866_s30 + $0x230] sm:$0xff]  ;;  %v322_v18 = vld [vmem:[%s1866_s30 + $0x98] sm:$0xff]  ;;  %v319_v20 = vld [vmem:[%s1866_s30 + $0x80] sm:$0xff]  ;;  %p1644_p7 = scmp.ne.s32.totalorder %s1642_s11, %s1643_s23  ;;  %p1648_p10 = scmp.lt.s32.totalorder %s1642_s11, %s2585_s3 }
  0x38   : > { %540 = vmatpush.msra.mxu2 %v340_v6  ;;  %v370_v19 = vld [vmem:[%s1866_s30 + $0x218] sm:$0xff]  ;;  %v367_v21 = vld [vmem:[%s1866_s30 + $0x200] sm:$0xff]  ;;  %v316_v22 = vld [vmem:[%s1866_s30 + $0x68] sm:$0xff]  ;;  %p1649_p11 = scmp.lt.s32.totalorder %s1647_s22, %s1643_s23 }
  0x39   : > { %605 = vmatpush.msra.mxu3 %v388_v7  ;;  %v364_v23 = vld [vmem:[%s1866_s30 + $0x1e8] sm:$0xff]  ;;  %v313_v24 = vld [vmem:[%s1866_s30 + $0x50] sm:$0xff]  ;;  %v310_v26 = vld [vmem:[%s1866_s30 + $0x38] sm:$0xff]  ;;  %p1645_p8 = pnand %p1644_p7, %p1826_p0 }
  0x3a   : > { %541 = vmatpush.msra.mxu2 %v337_v8  ;;  %v361_v25 = vld [vmem:[%s1866_s30 + $0x1d0] sm:$0xff]  ;;  %v358_v27 = vld [vmem:[%s1866_s30 + $0x1b8] sm:$0xff]  ;;  %v307_v28 = vld [vmem:[%s1866_s30 + $0x20] sm:$0xff]  ;;  %p1650_p12 = por %p1649_p11, %p1648_p10 }
  0x3b   : > { %606 = vmatpush.msra.mxu3 %v385_v9  ;;  %v355_v29 = vld [vmem:[%s1866_s30 + $0x1a0] sm:$0xff]  ;;  %v304_v30 = vld [vmem:[%s1866_s30 + $0x8] sm:$0xff]  ;;  %v1910_v34 = vld [vmem:[#allocation2 + $0x10] sm:$0xff]  ;;  %p1646_p9 = pneg %p1645_p8 }
  0x3c   : > { %542 = vmatpush.msra.mxu2 %v334_v10  ;;  %v352_v31 = vld [vmem:[%s1866_s30 + $0x188] sm:$0xff]  ;;  %v1904_v32 = vld [vmem:[#allocation2] sm:$0xff]  ;;  %v1912_v35 = vld [vmem:[#allocation2 + $0x18] sm:$0xff] }
  0x3d   : > { %607 = vmatpush.msra.mxu3 %v382_v11  ;;  %v1906_v33 = vld [vmem:[#allocation2 + $0x8] sm:$0xff]  ;;  %v345_v37 = vld [vmem:[%s1866_s30 + $0x150] sm:$0xff]  ;;  %v342_v40 = vld [vmem:[%s1866_s30 + $0x138] sm:$0xff]  ;;  %p1651_p13 = pnand %p1650_p12, %p1646_p9 }
  0x3e   : > { %543 = vmatpush.msra.mxu2 %v331_v12  ;;  %v348_v36 = vld [vmem:[%s1866_s30 + $0x168] sm:$0xff]  ;;  %v393_v39 = vld [vmem:[%s1866_s30 + $0x2d0] sm:$0xff]  ;;  %v390_v41 = vld [vmem:[%s1866_s30 + $0x2b8] sm:$0xff] }
  0x3f   : > { %608 = vmatpush.msra.mxu3 %v379_v13  ;;  %407 = vmatpush.msra.mxu0 %v348_v36  ;;  %v396_v38 = vld [vmem:[%s1866_s30 + $0x2e8] sm:$0xff]  ;;  %v339_v42 = vld [vmem:[%s1866_s30 + $0x120] sm:$0xff]  ;;  %v333_v47 = vld [vmem:[%s1866_s30 + $0xf0] sm:$0xff] }
  0x40   : > { %544 = vmatpush.msra.mxu2 %v328_v14  ;;  %472 = vmatpush.msra.mxu1 %v396_v38  ;;  %v1923_v43 = vld [vmem:[#allocation2 + $0x20] sm:$0xff]  ;;  %v1925_v44 = vld [vmem:[#allocation2 + $0x28] sm:$0xff]  ;;  %v330_v49 = vld [vmem:[%s1866_s30 + $0xd8] sm:$0xff] }
  0x41   : > { %609 = vmatpush.msra.mxu3 %v376_v15  ;;  %408 = vmatpush.msra.mxu0 %v345_v37  ;;  %v336_v45 = vld [vmem:[%s1866_s30 + $0x108] sm:$0xff]  ;;  %v387_v46 = vld [vmem:[%s1866_s30 + $0x2a0] sm:$0xff]  ;;  %v381_v50 = vld [vmem:[%s1866_s30 + $0x270] sm:$0xff] }
  0x42   : > { %545 = vmatpush.msra.mxu2 %v325_v16  ;;  %473 = vmatpush.msra.mxu1 %v393_v39  ;;  %v384_v48 = vld [vmem:[%s1866_s30 + $0x288] sm:$0xff]  ;;  %v327_v51 = vld [vmem:[%s1866_s30 + $0xc0] sm:$0xff]  ;;  %v378_v52 = vld [vmem:[%s1866_s30 + $0x258] sm:$0xff] }
  0x43   : > { %610 = vmatpush.msra.mxu3 %v373_v17  ;;  %409 = vmatpush.msra.mxu0 %v342_v40  ;;  %v1937_v53 = vld [vmem:[#allocation2 + $0x30] sm:$0xff]  ;;  %v1939_v54 = vld [vmem:[#allocation2 + $0x38] sm:$0xff]  ;;  %v324_v55 = vld [vmem:[%s1866_s30 + $0xa8] sm:$0xff] }
  0x44   : > { %546 = vmatpush.msra.mxu2 %v322_v18  ;;  %474 = vmatpush.msra.mxu1 %v390_v41  ;;  %v375_v56 = vld [vmem:[%s1866_s30 + $0x240] sm:$0xff]  ;;  %v321_v57 = vld [vmem:[%s1866_s30 + $0x90] sm:$0xff]  ;;  %v372_v58 = vld [vmem:[%s1866_s30 + $0x228] sm:$0xff] }
  0x45   : > { %611 = vmatpush.msra.mxu3 %v370_v19  ;;  %410 = vmatpush.msra.mxu0 %v339_v42  ;;  %v318_v59 = vld [vmem:[%s1866_s30 + $0x78] sm:$0xff]  ;;  %v369_v60 = vld [vmem:[%s1866_s30 + $0x210] sm:$0xff]  ;;  %v315_v61 = vld [vmem:[%s1866_s30 + $0x60] sm:$0xff] }
  0x46   : > { %547 = vmatpush.msra.mxu2 %v319_v20  ;;  %475 = vmatpush.msra.mxu1 %v387_v46  ;;  %v366_v62 = vld [vmem:[%s1866_s30 + $0x1f8] sm:$0xff]  ;;  %v1951_v63 = vld [vmem:[#allocation2 + $0x40] sm:$0xff]  ;;  %v1953_v0 = vld [vmem:[#allocation2 + $0x48] sm:$0xff] }
  0x47   : > { %612 = vmatpush.msra.mxu3 %v367_v21  ;;  %411 = vmatpush.msra.mxu0 %v336_v45  ;;  %v312_v1 = vld [vmem:[%s1866_s30 + $0x48] sm:$0xff]  ;;  %v363_v2 = vld [vmem:[%s1866_s30 + $0x1e0] sm:$0xff]  ;;  %v309_v3 = vld [vmem:[%s1866_s30 + $0x30] sm:$0xff] }
  0x48   : > { %548 = vmatpush.msra.mxu2 %v316_v22  ;;  %476 = vmatpush.msra.mxu1 %v384_v48  ;;  %v360_v4 = vld [vmem:[%s1866_s30 + $0x1c8] sm:$0xff]  ;;  %v306_v5 = vld [vmem:[%s1866_s30 + $0x18] sm:$0xff]  ;;  %v357_v6 = vld [vmem:[%s1866_s30 + $0x1b0] sm:$0xff] }
  0x49   : > { %613 = vmatpush.msra.mxu3 %v364_v23  ;;  %412 = vmatpush.msra.mxu0 %v333_v47  ;;  %v303_v7 = vld [vmem:[%s1866_s30] sm:$0xff]  ;;  %v354_v8 = vld [vmem:[%s1866_s30 + $0x198] sm:$0xff]  ;;  %v1965_v9 = vld [vmem:[#allocation2 + $0x50] sm:$0xff] }
  0x4a   : > { %549 = vmatpush.msra.mxu2 %v313_v24  ;;  %477 = vmatpush.msra.mxu1 %v381_v50  ;;  %v1967_v10 = vld [vmem:[#allocation2 + $0x58] sm:$0xff]  ;;  %v351_v11 = vld [vmem:[%s1866_s30 + $0x180] sm:$0xff]  ;;  %v1976_v13 = vld [vmem:[#allocation2 + $0x68] sm:$0xff] }
  0x4b   : > { %614 = vmatpush.msra.mxu3 %v361_v25  ;;  %413 = vmatpush.msra.mxu0 %v330_v49  ;;  %v1974_v12 = vld [vmem:[#allocation2 + $0x60] sm:$0xff]  ;;  %v1982_v14 = vld [vmem:[#allocation2 + $0x70] sm:$0xff]  ;;  %v1984_v15 = vld [vmem:[#allocation2 + $0x78] sm:$0xff] }
  0x4c   : > { %550 = vmatpush.msra.mxu2 %v310_v26  ;;  %478 = vmatpush.msra.mxu1 %v378_v52  ;;  %v1990_v16 = vld [vmem:[#allocation2 + $0x80] sm:$0xff]  ;;  %v1992_v17 = vld [vmem:[#allocation2 + $0x88] sm:$0xff]  ;;  %v1998_v18 = vld [vmem:[#allocation2 + $0x90] sm:$0xff] }
  0x4d   : > { %615 = vmatpush.msra.mxu3 %v358_v27  ;;  %414 = vmatpush.msra.mxu0 %v327_v51  ;;  %v2000_v19 = vld [vmem:[#allocation2 + $0x98] sm:$0xff]  ;;  %v2006_v20 = vld [vmem:[#allocation2 + $0xa0] sm:$0xff]  ;;  %v2008_v21 = vld [vmem:[#allocation2 + $0xa8] sm:$0xff] }
  0x4e   : > { %551 = vmatpush.msra.mxu2 %v307_v28  ;;  %479 = vmatpush.msra.mxu1 %v375_v56  ;;  %v2014_v22 = vld [vmem:[#allocation2 + $0xb0] sm:$0xff]  ;;  %v2016_v23 = vld [vmem:[#allocation2 + $0xb8] sm:$0xff]  ;;  %v2022_v24 = vld [vmem:[#allocation2 + $0xc0] sm:$0xff] }
  0x4f   : > { %616 = vmatpush.msra.mxu3 %v355_v29  ;;  %415 = vmatpush.msra.mxu0 %v324_v55  ;;  %v2024_v25 = vld [vmem:[#allocation2 + $0xc8] sm:$0xff]  ;;  %v2030_v26 = vld [vmem:[#allocation2 + $0xd0] sm:$0xff]  ;;  %v2032_v27 = vld [vmem:[#allocation2 + $0xd8] sm:$0xff] }
  0x50   : > { %552 = vmatpush.msra.mxu2 %v304_v30  ;;  %480 = vmatpush.msra.mxu1 %v372_v58  ;;  %v2038_v28 = vld [vmem:[#allocation2 + $0xe0] sm:$0xff]  ;;  %v2040_v29 = vld [vmem:[#allocation2 + $0xe8] sm:$0xff]  ;;  %v2046_v30 = vld [vmem:[#allocation2 + $0xf0] sm:$0xff] }
  0x51   : > { %617 = vmatpush.msra.mxu3 %v352_v31  ;;  %553 = vmatmul.f32.vlgmr.msra.gmra.mxu2 %v1904_v32  ;;  %v2048_v31 = vld [vmem:[#allocation2 + $0xf8] sm:$0xff]  ;;  %v347_v41 = vld [vmem:[%s1866_s30 + $0x160] sm:$0xff]  ;;  %v344_v45 = vld [vmem:[%s1866_s30 + $0x148] sm:$0xff] }
  0x52   : > { %618 = vmatmul.f32.vlgmr.msra.gmra.mxu3 %v1906_v33  ;;  %416 = vmatpush.msra.mxu0 %v321_v57  ;;  %v350_v38 = vld [vmem:[%s1866_s30 + $0x178] sm:$0xff]  ;;  %v395_v46 = vld [vmem:[%s1866_s30 + $0x2e0] sm:$0xff]  ;;  %v341_v47 = vld [vmem:[%s1866_s30 + $0x130] sm:$0xff] }
  0x53   : > { %481 = vmatpush.msra.mxu1 %v369_v60  ;;  %v398_v42 = vld [vmem:[%s1866_s30 + $0x2f8] sm:$0xff]  ;;  %v392_v48 = vld [vmem:[%s1866_s30 + $0x2c8] sm:$0xff]  ;;  %v389_v50 = vld [vmem:[%s1866_s30 + $0x2b0] sm:$0xff] }
  0x54   : > { %417 = vmatpush.msra.mxu0 %v318_v59  ;;  %v338_v49 = vld [vmem:[%s1866_s30 + $0x118] sm:$0xff]  ;;  %v335_v55 = vld [vmem:[%s1866_s30 + $0x100] sm:$0xff]  ;;  %v332_v57 = vld [vmem:[%s1866_s30 + $0xe8] sm:$0xff] }
  0x55   : > { %482 = vmatpush.msra.mxu1 %v366_v62  ;;  %v386_v56 = vld [vmem:[%s1866_s30 + $0x298] sm:$0xff]  ;;  %v383_v58 = vld [vmem:[%s1866_s30 + $0x280] sm:$0xff]  ;;  %v329_v59 = vld [vmem:[%s1866_s30 + $0xd0] sm:$0xff] }
  0x56   : > { %418 = vmatpush.msra.mxu0 %v315_v61  ;;  %v380_v60 = vld [vmem:[%s1866_s30 + $0x268] sm:$0xff]  ;;  %v326_v61 = vld [vmem:[%s1866_s30 + $0xb8] sm:$0xff]  ;;  %v377_v62 = vld [vmem:[%s1866_s30 + $0x250] sm:$0xff] }
  0x57   : > { %483 = vmatpush.msra.mxu1 %v363_v2 }
  0x58   : > { %419 = vmatpush.msra.mxu0 %v312_v1 }
  0x59   : > { %556 = vmatmul.f32.gmra.mxu2 %v1910_v34  ;;  %484 = vmatpush.msra.mxu1 %v360_v4  ;;  %v374_v4 = vld [vmem:[%s1866_s30 + $0x238] sm:$0xff] }
  0x5a   : > { %621 = vmatmul.f32.gmra.mxu3 %v1912_v35  ;;  %420 = vmatpush.msra.mxu0 %v309_v3  ;;  %v323_v3 = vld [vmem:[%s1866_s30 + $0xa0] sm:$0xff] }
  0x5b   : > { %485 = vmatpush.msra.mxu1 %v357_v6  ;;  %v371_v6 = vld [vmem:[%s1866_s30 + $0x220] sm:$0xff] }
  0x5c   : > { %421 = vmatpush.msra.mxu0 %v306_v5  ;;  %v320_v5 = vld [vmem:[%s1866_s30 + $0x88] sm:$0xff] }
  0x5d   : > { %486 = vmatpush.msra.mxu1 %v354_v8  ;;  %v368_v8 = vld [vmem:[%s1866_s30 + $0x208] sm:$0xff] }
  0x5e   : > { %422 = vmatpush.msra.mxu0 %v303_v7  ;;  %v317_v7 = vld [vmem:[%s1866_s30 + $0x70] sm:$0xff] }
  0x5f   : > { %423 = vmatmul.f32.vlgmr.msra.gmra.mxu0 %v1904_v32  ;;  %487 = vmatpush.msra.mxu1 %v351_v11  ;;  %v314_v11 = vld [vmem:[%s1866_s30 + $0x58] sm:$0xff] }
  0x60   : > { %488 = vmatmul.f32.vlgmr.msra.gmra.mxu1 %v1906_v33  ;;  %667 = vmatpush.msrb.mxu0 %v350_v38  ;;  %v365_v38 = vld [vmem:[%s1866_s30 + $0x1f0] sm:$0xff] }
  0x61   : > { %559 = vmatmul.f32.gmra.mxu2 %v1923_v43  ;;  %732 = vmatpush.msrb.mxu1 %v398_v42 }
  0x62   : > { %624 = vmatmul.f32.gmra.mxu3 %v1925_v44  ;;  %668 = vmatpush.msrb.mxu0 %v347_v41 }
  0x63   : > { %733 = vmatpush.msrb.mxu1 %v395_v46  ;;  %v362_v46 = vld [vmem:[%s1866_s30 + $0x1d8] sm:$0xff] }
  0x64   : > { %669 = vmatpush.msrb.mxu0 %v344_v45  ;;  %v311_v45 = vld [vmem:[%s1866_s30 + $0x40] sm:$0xff] }
  0x65   : > { %734 = vmatpush.msrb.mxu1 %v392_v48  ;;  %v308_v48 = vld [vmem:[%s1866_s30 + $0x28] sm:$0xff] }
  0x66   : > { %670 = vmatpush.msrb.mxu0 %v341_v47 }
  0x67   : > { %426 = vmatmul.f32.gmra.mxu0 %v1910_v34  ;;  %735 = vmatpush.msrb.mxu1 %v389_v50  ;;  %v305_v50 = vld [vmem:[%s1866_s30 + $0x10] sm:$0xff] }
  0x68   : > { %491 = vmatmul.f32.gmra.mxu1 %v1912_v35  ;;  %671 = vmatpush.msrb.mxu0 %v338_v49  ;;  %v359_v49 = vld [vmem:[%s1866_s30 + $0x1c0] sm:$0xff] }
  0x69   : > { %562 = vmatmul.f32.gmra.mxu2 %v1937_v53  ;;  %736 = vmatpush.msrb.mxu1 %v386_v56  ;;  %v356_v56 = vld [vmem:[%s1866_s30 + $0x1a8] sm:$0xff] }
  0x6a   : > { %627 = vmatmul.f32.gmra.mxu3 %v1939_v54  ;;  %672 = vmatpush.msrb.mxu0 %v335_v55 }
  0x6b   : > { %737 = vmatpush.msrb.mxu1 %v383_v58 }
  0x6c   : > { %673 = vmatpush.msrb.mxu0 %v332_v57  ;;  %v353_v57 = vld [vmem:[%s1866_s30 + $0x190] sm:$0xff] }
  0x6d   : > { %738 = vmatpush.msrb.mxu1 %v380_v60 }
  0x6e   : > { %674 = vmatpush.msrb.mxu0 %v329_v59 }
  0x6f   : > { %429 = vmatmul.f32.gmra.mxu0 %v1923_v43  ;;  %739 = vmatpush.msrb.mxu1 %v377_v62 }
  0x70   : > { %494 = vmatmul.f32.gmra.mxu1 %v1925_v44  ;;  %675 = vmatpush.msrb.mxu0 %v326_v61 }
  0x71   : > { %565 = vmatmul.f32.gmra.mxu2 %v1951_v63  ;;  %740 = vmatpush.msrb.mxu1 %v374_v4 }
  0x72   : > { %630 = vmatmul.f32.gmra.mxu3 %v1953_v0  ;;  %676 = vmatpush.msrb.mxu0 %v323_v3 }
  0x73   : > { %741 = vmatpush.msrb.mxu1 %v371_v6 }
  0x74   : > { %677 = vmatpush.msrb.mxu0 %v320_v5 }
  0x75   : > { %742 = vmatpush.msrb.mxu1 %v368_v8 }
  0x76   : > { %678 = vmatpush.msrb.mxu0 %v317_v7 }
  0x77   : > { %432 = vmatmul.f32.gmra.mxu0 %v1937_v53  ;;  %743 = vmatpush.msrb.mxu1 %v365_v38 }
  0x78   : > { %497 = vmatmul.f32.gmra.mxu1 %v1939_v54  ;;  %679 = vmatpush.msrb.mxu0 %v314_v11 }
  0x79   : > { %568 = vmatmul.f32.gmra.mxu2 %v1965_v9  ;;  %744 = vmatpush.msrb.mxu1 %v362_v46 }
  0x7a   : > { %633 = vmatmul.f32.gmra.mxu3 %v1967_v10  ;;  %680 = vmatpush.msrb.mxu0 %v311_v45 }
  0x7b   : > { %745 = vmatpush.msrb.mxu1 %v359_v49 }
  0x7c   : > { %681 = vmatpush.msrb.mxu0 %v308_v48 }
  0x7d   : > { %746 = vmatpush.msrb.mxu1 %v356_v56 }
  0x7e   : > { %682 = vmatpush.msrb.mxu0 %v305_v50 }
  0x7f   : > { %435 = vmatmul.f32.gmra.mxu0 %v1951_v63  ;;  %747 = vmatpush.msrb.mxu1 %v353_v57 }
  0x80   : > { %500 = vmatmul.f32.gmra.mxu1 %v1953_v0 }
  0x81   : > { %571 = vmatmul.f32.gmra.mxu2 %v1974_v12 }
  0x82   : > { %636 = vmatmul.f32.gmra.mxu3 %v1976_v13 }
  0x87   : > { %438 = vmatmul.f32.gmra.mxu0 %v1965_v9 }
  0x88   : > { %503 = vmatmul.f32.gmra.mxu1 %v1967_v10 }
  0x89   : > { %574 = vmatmul.f32.gmra.mxu2 %v1982_v14 }
  0x8a   : > { %639 = vmatmul.f32.gmra.mxu3 %v1984_v15 }
  0x8f   : > { %441 = vmatmul.f32.gmra.mxu0 %v1974_v12 }
  0x90   : > { %506 = vmatmul.f32.gmra.mxu1 %v1976_v13 }
  0x91   : > { %577 = vmatmul.f32.gmra.mxu2 %v1990_v16 }
  0x92   : > { %642 = vmatmul.f32.gmra.mxu3 %v1992_v17 }
  0x97   : > { %444 = vmatmul.f32.gmra.mxu0 %v1982_v14 }
  0x98   : > { %509 = vmatmul.f32.gmra.mxu1 %v1984_v15 }
  0x99   : > { %580 = vmatmul.f32.gmra.mxu2 %v1998_v18 }
  0x9a   : > { %645 = vmatmul.f32.gmra.mxu3 %v2000_v19 }
  0x9f   : > { %447 = vmatmul.f32.gmra.mxu0 %v1990_v16 }
  0xa0   : > { %512 = vmatmul.f32.gmra.mxu1 %v1992_v17 }
  0xa1   : > { %583 = vmatmul.f32.gmra.mxu2 %v2006_v20 }
  0xa2   : > { %648 = vmatmul.f32.gmra.mxu3 %v2008_v21 }
  0xa7   : > { %450 = vmatmul.f32.gmra.mxu0 %v1998_v18 }
  0xa8   : > { %515 = vmatmul.f32.gmra.mxu1 %v2000_v19 }
  0xa9   : > { %586 = vmatmul.f32.gmra.mxu2 %v2014_v22 }
  0xaa   : > { %651 = vmatmul.f32.gmra.mxu3 %v2016_v23 }
  0xaf   : > { %453 = vmatmul.f32.gmra.mxu0 %v2006_v20 }
  0xb0   : > { %518 = vmatmul.f32.gmra.mxu1 %v2008_v21 }
  0xb1   : > { %589 = vmatmul.f32.gmra.mxu2 %v2022_v24 }
  0xb2   : > { %654 = vmatmul.f32.gmra.mxu3 %v2024_v25 }
  0xb7   : > { %456 = vmatmul.f32.gmra.mxu0 %v2014_v22 }
  0xb8   : > { %521 = vmatmul.f32.gmra.mxu1 %v2016_v23 }
  0xb9   : > { %592 = vmatmul.f32.gmra.mxu2 %v2030_v26 }
  0xba   : > { %657 = vmatmul.f32.gmra.mxu3 %v2032_v27 }
  0xbf   : > { %459 = vmatmul.f32.gmra.mxu0 %v2022_v24 }
  0xc0   : > { %524 = vmatmul.f32.gmra.mxu1 %v2024_v25 }
  0xc1   : > { %595 = vmatmul.f32.gmra.mxu2 %v2038_v28 }
  0xc2   : > { %660 = vmatmul.f32.gmra.mxu3 %v2040_v29 }
  0xc7   : > { %462 = vmatmul.f32.gmra.mxu0 %v2030_v26 }
  0xc8   : > { %527 = vmatmul.f32.gmra.mxu1 %v2032_v27 }
  0xc9   : > { %598 = vmatmul.f32.gmra.mxu2 %v2046_v30 }
  0xca   : > { %663 = vmatmul.f32.gmra.mxu3 %v2048_v31 }
  0xcf   : > { %465 = vmatmul.f32.gmra.mxu0 %v2038_v28 }
  0xd0   : > { %530 = vmatmul.f32.gmra.mxu1 %v2040_v29 }
  0xd4   : > { %v2056_v36 = vpop.f32.mrf.mxu2 }
  0xd5   : > { %v2058_v37 = vpop.f32.mrf.mxu3 }
  0xd7   : > { %468 = vmatmul.f32.gmra.mxu0 %v2046_v30 }
  0xd8   : > { %533 = vmatmul.f32.gmra.mxu1 %v2048_v31 }
  0xdc   : > { %v2063_v39 = vpop.f32.mrf.mxu2  ;;  %v2107_v47 = vpop.f32.mrf.mxu0 }
  0xdd   : > { %v2065_v40 = vpop.f32.mrf.mxu3  ;;  %v2112_v55 = vpop.f32.mrf.mxu1 }
  0xdf   : > { %683 = vmatmul.f32.vlgmr.msrb.gmra.mxu0 %v1904_v32  ;;  %v2127_v32 = vld [vmem:[%s238_s6] sm:$0x7] }
  0xe0   : > { %748 = vmatmul.f32.vlgmr.msrb.gmra.mxu1 %v1906_v33  ;;  %v2132_v33 = vperm.slane %v2127_v32, 1 }
  0xe4   : > { %v2077_v51 = vpop.f32.mrf.mxu2  ;;  %v2118_v60 = vpop.f32.mrf.mxu0 }
  0xe5   : > { %v2079_v52 = vpop.f32.mrf.mxu3  ;;  %v2120_v61 = vpop.f32.mrf.mxu1 }
  0xe7   : > { %686 = vmatmul.f32.gmra.mxu0 %v1910_v34 }
  0xe8   : > { %751 = vmatmul.f32.gmra.mxu1 %v1912_v35 }
  0xec   : > { %v2091_v1 = vpop.f32.mrf.mxu2  ;;  %v2125_v4 = vpop.f32.mrf.mxu0 }
  0xed   : > { %v2093_v2 = vpop.f32.mrf.mxu3  ;;  %v2129_v5 = vpop.f32.mrf.mxu1 }
  0xef   : > { %689 = vmatmul.f32.gmra.mxu0 %v1923_v43 }
  0xf0   : > { %754 = vmatmul.f32.gmra.mxu1 %v1925_v44 }
  0xf4   : > { %v566_v41 = vpop.f32.mrf.mxu2  ;;  %v2138_v11 = vpop.f32.mrf.mxu0 }
  0xf5   : > { %v631_v42 = vpop.f32.mrf.mxu3  ;;  %v2140_v38 = vpop.f32.mrf.mxu1  ;;  %v567_v44 = vadd.f32 %v566_v41, %v2132_v33  ;;  %v561_v41 = vadd.f32 %v2077_v51, %v2132_v33 }
  0xf7   : > { %692 = vmatmul.f32.gmra.mxu0 %v1937_v53  ;;  %v564_v53 = vadd.f32 %v2091_v1, %v2132_v33 }
  0xf8   : > { %757 = vmatmul.f32.gmra.mxu1 %v1939_v54 }
  0xfc   : > { %v569_v58 = vpop.f32.mrf.mxu2  ;;  %v2149_v57 = vpop.f32.mrf.mxu0 }
  0xfd   : > { %v634_v59 = vpop.f32.mrf.mxu3  ;;  %v570_v45 = vadd.f32 %v569_v58, %v2132_v33  ;;  %v632_v58 = vadd.f32 %v631_v42, %v567_v44  ;;  %v626_v42 = vadd.f32 %v2079_v52, %v561_v41 }
  0xff   : > { %v635_v56 = vadd.f32 %v634_v59, %v570_v45  ;;  %695 = vmatmul.f32.gmra.mxu0 %v1951_v63  ;;  %v558_v63 = vadd.f32 %v2063_v39, %v2132_v33 }
 0x100   : > { %760 = vmatmul.f32.gmra.mxu1 %v1953_v0  ;;  %v2172_v0 = vperm.slane %v2127_v32, 0 }
 0x104   : > { %v572_v62 = vpop.f32.mrf.mxu2 }
 0x105   : > { %v637_v3 = vpop.f32.mrf.mxu3  ;;  %v573_v35 = vadd.f32 %v572_v62, %v2132_v33  ;;  %v2151_v62 = vpop.f32.mrf.mxu1 }
 0x107   : > { %v638_v46 = vadd.f32 %v637_v3, %v573_v35  ;;  %698 = vmatmul.f32.gmra.mxu0 %v1965_v9  ;;  %v425_v9 = vadd.f32 %v2107_v47, %v2172_v0 }
 0x108   : > { %763 = vmatmul.f32.gmra.mxu1 %v1967_v10 }
 0x10c   : > { %v575_v6 = vpop.f32.mrf.mxu2 }
 0x10d   : > { %v640_v7 = vpop.f32.mrf.mxu3  ;;  %v576_v34 = vadd.f32 %v575_v6, %v2132_v33  ;;  %v2165_v1 = vpop.f32.mrf.mxu1 }
 0x10f   : > { %v641_v8 = vadd.f32 %v640_v7, %v576_v34  ;;  %v629_v7 = vadd.f32 %v2093_v2, %v564_v53  ;;  %v2163_v34 = vpop.f32.mrf.mxu0  ;;  %v555_v2 = vadd.f32 %v2056_v36, %v2132_v33  ;;  %701 = vmatmul.f32.gmra.mxu0 %v1974_v12 }
 0x110   : > { %766 = vmatmul.f32.gmra.mxu1 %v1976_v13  ;;  %v431_v13 = vadd.f32 %v2125_v4, %v2172_v0 }
 0x111   : > { %824 = vmatpush.xpose.msrb.mxu2 %v641_v8  ;;  %v623_v8 = vadd.f32 %v2065_v40, %v558_v63  ;;  %v620_v45 = vadd.f32 %v2058_v37, %v555_v2  ;;  %v428_v40 = vadd.f32 %v2118_v60, %v2172_v0 }
 0x114   : > { %v578_v43 = vpop.f32.mrf.mxu2 }
 0x115   : > { %v643_v48 = vpop.f32.mrf.mxu3  ;;  %v579_v49 = vadd.f32 %v578_v43, %v2132_v33  ;;  %825 = vmatpush.xpose.msrb.mxu2 %v638_v46  ;;  %v2186_v52 = vpop.f32.mrf.mxu1  ;;  %v490_v46 = vadd.f32 %v2112_v55, %v425_v9  ;;  %v493_v55 = vadd.f32 %v2120_v61, %v428_v40 }
 0x117   : > { %v2147_v50 = vadd.f32 %v643_v48, %v579_v49  ;;  %v2182_v39 = vpop.f32.mrf.mxu0  ;;  %704 = vmatmul.f32.gmra.mxu0 %v1982_v14  ;;  %v496_v14 = vadd.f32 %v2129_v5, %v431_v13 }
 0x118   : > { %769 = vmatmul.f32.gmra.mxu1 %v1984_v15  ;;  %v434_v15 = vadd.f32 %v2138_v11, %v2172_v0 }
 0x119   : > { %826 = vmatpush.xpose.msrb.mxu2 %v635_v56 }
 0x11c   : > { %v581_v3 = vpop.f32.mrf.mxu2 }
 0x11d   : > { %v646_v6 = vpop.f32.mrf.mxu3  ;;  %v582_v54 = vadd.f32 %v581_v3, %v2132_v33  ;;  %827 = vmatpush.xpose.msrb.mxu2 %v632_v58  ;;  %v2198_v47 = vpop.f32.mrf.mxu1 }
 0x11f   : > { %v2160_v59 = vadd.f32 %v646_v6, %v582_v54  ;;  %v2194_v36 = vpop.f32.mrf.mxu0  ;;  %707 = vmatmul.f32.gmra.mxu0 %v1990_v16  ;;  %v499_v16 = vadd.f32 %v2140_v38, %v434_v15 }
 0x120   : > { %772 = vmatmul.f32.gmra.mxu1 %v1992_v17  ;;  %v437_v17 = vadd.f32 %v2149_v57, %v2172_v0  ;;  %v440_v57 = vadd.f32 %v2163_v34, %v2172_v0  ;;  %v443_v34 = vadd.f32 %v2182_v39, %v2172_v0  ;;  %v446_v39 = vadd.f32 %v2194_v36, %v2172_v0 }
 0x121   : > { %828 = vmatpush.xpose.msrb.mxu2 %v629_v7 }
 0x124   : > { %v2174_v51 = vpop.f32.mrf.mxu2 }
 0x125   : > { %v2176_v35 = vpop.f32.mrf.mxu3  ;;  %829 = vmatpush.xpose.msrb.mxu2 %v626_v42  ;;  %v2207_v49 = vpop.f32.mrf.mxu1 }
 0x127   : > { %v2203_v48 = vpop.f32.mrf.mxu0  ;;  %710 = vmatmul.f32.gmra.mxu0 %v1998_v18  ;;  %v502_v18 = vadd.f32 %v2151_v62, %v437_v17  ;;  %v505_v62 = vadd.f32 %v2165_v1, %v440_v57 }
 0x128   : > { %775 = vmatmul.f32.gmra.mxu1 %v2000_v19 }
 0x129   : > { %830 = vmatpush.xpose.msrb.mxu2 %v623_v8 }
 0x12c   : > { %v587_v10 = vpop.f32.mrf.mxu2 }
 0x12d   : > { %v2191_v43 = vpop.f32.mrf.mxu3  ;;  %831 = vmatpush.xpose.msrb.mxu2 %v620_v45  ;;  %v2216_v61 = vpop.f32.mrf.mxu1  ;;  %v588_v8 = vadd.f32 %v587_v10, %v2132_v33 }
 0x12f   : > { %v2212_v56 = vpop.f32.mrf.mxu0  ;;  %713 = vmatmul.f32.gmra.mxu0 %v2006_v20  ;;  %v653_v1 = vadd.f32 %v2191_v43, %v588_v8 }
 0x130   : > { %832 = vmatmul.f32.vlgmr.msrb.gmra.mxu2 %v490_v46  ;;  %778 = vmatmul.f32.gmra.mxu1 %v2008_v21 }
 0x134   : > { %v590_v37 = vpop.f32.mrf.mxu2 }
 0x135   : > { %v655_v12 = vpop.f32.mrf.mxu3  ;;  %v2225_v5 = vpop.f32.mrf.mxu1  ;;  %v591_v21 = vadd.f32 %v590_v37, %v2132_v33 }
 0x137   : > { %v2221_v58 = vpop.f32.mrf.mxu0  ;;  %716 = vmatmul.f32.gmra.mxu0 %v2014_v22  ;;  %v656_v9 = vadd.f32 %v655_v12, %v591_v21  ;;  %v508_v22 = vadd.f32 %v2186_v52, %v443_v34 }
 0x138   : > { %835 = vmatmul.f32.gmra.mxu2 %v493_v55  ;;  %781 = vmatmul.f32.gmra.mxu1 %v2016_v23  ;;  %v585_v23 = vadd.f32 %v2174_v51, %v2132_v33 }
 0x13a   : > { %v650_v10 = vadd.f32 %v2176_v35, %v585_v23 }
 0x13c   : > { %v593_v60 = vpop.f32.mrf.mxu2 }
 0x13d   : > { %v658_v44 = vpop.f32.mrf.mxu3  ;;  %v522_v41 = vpop.f32.mrf.mxu1  ;;  %v594_v20 = vadd.f32 %v593_v60, %v2132_v33 }
 0x13f   : > { %v457_v54 = vpop.f32.mrf.mxu0  ;;  %v659_v63 = vadd.f32 %v658_v44, %v594_v20  ;;  %719 = vmatmul.f32.gmra.mxu0 %v2022_v24  ;;  %v511_v24 = vadd.f32 %v2198_v47, %v446_v39 }
 0x140   : > { %838 = vmatmul.f32.gmra.mxu2 %v496_v14  ;;  %784 = vmatmul.f32.gmra.mxu1 %v2024_v25  ;;  %v449_v25 = vadd.f32 %v2203_v48, %v2172_v0 }
 0x142   : > { %v514_v52 = vadd.f32 %v2207_v49, %v449_v25 }
 0x144   : > { %v596_v4 = vpop.f32.mrf.mxu2 }
 0x145   : > { %v661_v53 = vpop.f32.mrf.mxu3  ;;  %v597_v19 = vadd.f32 %v596_v4, %v2132_v33  ;;  %v525_v2 = vpop.f32.mrf.mxu1 }
 0x147   : > { %v662_v7 = vadd.f32 %v661_v53, %v597_v19  ;;  %v460_v42 = vpop.f32.mrf.mxu0  ;;  %722 = vmatmul.f32.gmra.mxu0 %v2030_v26  ;;  %v452_v26 = vadd.f32 %v2212_v56, %v2172_v0 }
 0x148   : > { %841 = vmatmul.f32.gmra.mxu2 %v499_v16  ;;  %787 = vmatmul.f32.gmra.mxu1 %v2032_v27 }
 0x149   : > { %v517_v43 = vadd.f32 %v2216_v61, %v452_v26 }
 0x14c   : > { %v599_v11 = vpop.f32.mrf.mxu2 }
 0x14d   : > { %v664_v3 = vpop.f32.mrf.mxu3  ;;  %v600_v6 = vadd.f32 %v599_v11, %v2132_v33  ;;  %v528_v46 = vpop.f32.mrf.mxu1 }
 0x14f   : > { %v665_v38 = vadd.f32 %v664_v3, %v600_v6  ;;  %v463_v45 = vpop.f32.mrf.mxu0  ;;  %725 = vmatmul.f32.gmra.mxu0 %v2038_v28  ;;  %v2267_v28 = vperm.slane %v2127_v32, 2  ;;  %v461_v32 = vadd.f32 %v460_v42, %v2172_v0 }
 0x150   : > { %844 = vmatmul.f32.gmra.mxu2 %v502_v18  ;;  %790 = vmatmul.f32.gmra.mxu1 %v2040_v29  ;;  %v464_v49 = vadd.f32 %v463_v45, %v2172_v0 }
 0x151   : > { %1035 = vmatpush.xpose.msra.mxu2 %v665_v38  ;;  %v526_v13 = vadd.f32 %v525_v2, %v461_v32 }
 0x152   : > { %v529_v14 = vadd.f32 %v528_v46, %v464_v49 }
 0x155   : > { %1036 = vmatpush.xpose.msra.mxu2 %v662_v7  ;;  %v531_v51 = vpop.f32.mrf.mxu1 }
 0x157   : > { %v466_v33 = vpop.f32.mrf.mxu0  ;;  %728 = vmatmul.f32.gmra.mxu0 %v2046_v30  ;;  %v458_v30 = vadd.f32 %v457_v54, %v2172_v0 }
 0x158   : > { %847 = vmatmul.f32.gmra.mxu2 %v505_v62  ;;  %793 = vmatmul.f32.gmra.mxu1 %v2048_v31  ;;  %v467_v56 = vadd.f32 %v466_v33, %v2172_v0 }
 0x159   : > { %1037 = vmatpush.xpose.msra.mxu2 %v659_v63  ;;  %v523_v31 = vadd.f32 %v522_v41, %v458_v30 }
 0x15a   : > { %v532_v4 = vadd.f32 %v531_v51, %v467_v56 }
 0x15d   : > { %1038 = vmatpush.xpose.msra.mxu2 %v656_v9  ;;  %v534_v35 = vpop.f32.mrf.mxu1 }
 0x15f   : > { %v469_v27 = vpop.f32.mrf.mxu0 }
 0x160   : > { %850 = vmatmul.f32.gmra.mxu2 %v508_v22  ;;  %v470_v53 = vadd.f32 %v469_v27, %v2172_v0 }
 0x161   : > { %1039 = vmatpush.xpose.msra.mxu2 %v653_v1 }
 0x162   : > { %v535_v17 = vadd.f32 %v534_v35, %v470_v53 }
 0x165   : > { %1040 = vmatpush.xpose.msra.mxu2 %v650_v10  ;;  %v749_v36 = vpop.f32.mrf.mxu1  ;;  %v797_v10 = vlaneseq }
 0x167   : > { %v684_v29 = vpop.f32.mrf.mxu0  ;;  %v2293_v25 = vshrl.u32 %v797_v10, 7  ;;  %v2302_v26 = vand.u32 127, %v797_v10 }
 0x168   : > { %853 = vmatmul.f32.gmra.mxu2 %v511_v24 }
 0x169   : > { %1041 = vmatpush.xpose.msra.mxu2 %v2160_v59  ;;  %v685_v59 = vadd.f32 %v684_v29, %v2267_v28  ;;  %v2298_v51 = vadd.s32 40, %v2293_v25  ;;  %v2305_v27 = vadd.s32 8, %v2293_v25  ;;  %v2308_v35 = vadd.s32 32, %v2293_v25 }
 0x16a   : > { %v2317_v29 = vadd.s32 24, %v2293_v25  ;;  %vm808_vm4 = vcmp.ge.s32.totalorder %v2293_v25, %v2302_v26 }
 0x16b   : > { %v750_v40 = vadd.f32 %v749_v36, %v685_v59  ;;  %vm813_vm0 = vcmp.ge.s32.totalorder %v2298_v51, %v2302_v26  ;;  %vm809_vm1 = vcmp.ge.s32.totalorder %v2305_v27, %v2302_v26  ;;  %vm812_vm2 = vcmp.ge.s32.totalorder %v2308_v35, %v2302_v26 }
 0x16c   : > { %v2328_v36 = vadd.s32 56, %v2293_v25  ;;  %vm811_vm7 = vcmp.ge.s32.totalorder %v2317_v29, %v2302_v26 }
 0x16d   : > { %1042 = vmatpush.xpose.msra.mxu2 %v2147_v50  ;;  %v455_v50 = vadd.f32 %v2221_v58, %v2172_v0  ;;  %v752_v12 = vpop.f32.mrf.mxu1 }
 0x16e   : > { %vm815_vm8 = vcmp.ge.s32.totalorder %v2328_v36, %v2302_v26 }
 0x16f   : > { %v520_v47 = vadd.f32 %v2225_v5, %v455_v50  ;;  %v687_v37 = vpop.f32.mrf.mxu0  ;;  %v2314_v50 = vadd.s32 16, %v2293_v25 }
 0x170   : > { %1043 = vmatmul.f32.vlgmr.msra.gmra.mxu2 %v514_v52  ;;  %v688_v63 = vadd.f32 %v687_v37, %v2267_v28 }
 0x171   : > { %vm810_vm6 = vcmp.ge.s32.totalorder %v2314_v50, %v2302_v26 }
 0x172   : > { %v753_v8 = vadd.f32 %v752_v12, %v688_v63 }
 0x175   : > { %v755_v48 = vpop.f32.mrf.mxu1 }
 0x177   : > { %v690_v55 = vpop.f32.mrf.mxu0 }
 0x178   : > { %1046 = vmatmul.f32.gmra.mxu2 %v517_v43  ;;  %v691_v62 = vadd.f32 %v690_v55, %v2267_v28  ;;  %v2311_v43 = vadd.s32 48, %v2293_v25 }
 0x17a   : > { %v756_v34 = vadd.f32 %v755_v48, %v691_v62  ;;  %vm814_vm3 = vcmp.ge.s32.totalorder %v2311_v43, %v2302_v26 }
 0x17d   : > { %v758_v44 = vpop.f32.mrf.mxu1 }
 0x17f   : > { %v693_v60 = vpop.f32.mrf.mxu0 }
 0x180   : > { %1049 = vmatmul.f32.gmra.mxu2 %v520_v47  ;;  %v694_v20 = vadd.f32 %v693_v60, %v2267_v28 }
 0x182   : > { %v759_v42 = vadd.f32 %v758_v44, %v694_v20 }
 0x185   : > { %v761_v61 = vpop.f32.mrf.mxu1 }
 0x187   : > { %v696_v15 = vpop.f32.mrf.mxu0 }
 0x188   : > { %1052 = vmatmul.f32.gmra.mxu2 %v523_v31  ;;  %v697_v57 = vadd.f32 %v696_v15, %v2267_v28 }
 0x18a   : > { %v762_v21 = vadd.f32 %v761_v61, %v697_v57 }
 0x18d   : > { %v764_v58 = vpop.f32.mrf.mxu1 }
 0x18f   : > { %v699_v16 = vpop.f32.mrf.mxu0 }
 0x190   : > { %1055 = vmatmul.f32.gmra.mxu2 %v526_v13  ;;  %v700_v6 = vadd.f32 %v699_v16, %v2267_v28 }
 0x192   : > { %v765_v7 = vadd.f32 %v764_v58, %v700_v6 }
 0x195   : > { %v767_v11 = vpop.f32.mrf.mxu1 }
 0x197   : > { %v702_v5 = vpop.f32.mrf.mxu0 }
 0x198   : > { %1058 = vmatmul.f32.gmra.mxu2 %v529_v14  ;;  %v703_v3 = vadd.f32 %v702_v5, %v2267_v28 }
 0x19a   : > { %v768_v41 = vadd.f32 %v767_v11, %v703_v3 }
 0x19d   : > { %v770_v38 = vpop.f32.mrf.mxu1 }
 0x19f   : > { %v705_v18 = vpop.f32.mrf.mxu0 }
 0x1a0   : > { %1061 = vmatmul.f32.gmra.mxu2 %v532_v4  ;;  %v706_v19 = vadd.f32 %v705_v18, %v2267_v28 }
 0x1a2   : > { %v771_v0 = vadd.f32 %v770_v38, %v706_v19 }
 0x1a4   : > { %986 = vmatpush.msrb.mxu3 %v771_v0 }
 0x1a5   : > { %v2287_v1 = vpop.f32.mrf.mxu1 }
 0x1a6   : > { %987 = vmatpush.msrb.mxu3 %v768_v41 }
 0x1a7   : > { %v2285_v23 = vpop.f32.mrf.mxu0 }
 0x1a8   : > { %1064 = vmatmul.f32.gmra.mxu2 %v535_v17  ;;  %988 = vmatpush.msrb.mxu3 %v765_v7 }
 0x1aa   : > { %989 = vmatpush.msrb.mxu3 %v762_v21 }
 0x1ac   : > { %990 = vmatpush.msrb.mxu3 %v759_v42 }
 0x1ad   : > { %v2291_v46 = vpop.f32.mrf.mxu1 }
 0x1ae   : > { %991 = vmatpush.msrb.mxu3 %v756_v34 }
 0x1af   : > { %v2289_v45 = vpop.f32.mrf.mxu0 }
 0x1b0   : > { %992 = vmatpush.msrb.mxu3 %v753_v8 }
 0x1b2   : > { %993 = vmatpush.msrb.mxu3 %v750_v40 }
 0x1b3   : > { %v833_v54 = vpop.f32.mrf.mxu2 }
 0x1b4   : > { %v857_v55 = vsel %vm808_vm4, %v833_v54, -1e+30 }
 0x1b5   : > { %v2300_v52 = vpop.f32.mrf.mxu1  ;;  %v866_v61 = vsel %vm865_vm5, %v857_v55, -inf }
 0x1b7   : > { %v2295_v33 = vpop.f32.mrf.mxu0 }
 0x1bb   : > { %v836_v2 = vpop.f32.mrf.mxu2 }
 0x1bc   : > { %v858_v30 = vsel %vm809_vm1, %v836_v2, -1e+30 }
 0x1bd   : > { %v2352_v31 = vpop.f32.mrf.mxu1  ;;  %v867_v49 = vsel %vm865_vm5, %v858_v30, -inf }
 0x1bf   : > { %v2335_v47 = vpop.f32.mrf.mxu0 }
 0x1c3   : > { %v839_v9 = vpop.f32.mrf.mxu2 }
 0x1c4   : > { %v859_v48 = vsel %vm810_vm6, %v839_v9, -1e+30 }
 0x1c5   : > { %v868_v4 = vsel %vm865_vm5, %v859_v48, -inf  ;;  %v785_v6 = vpop.f32.mrf.mxu1 }
 0x1c7   : > { %v720_v11 = vpop.f32.mrf.mxu0 }
 0x1cb   : > { %v842_v22 = vpop.f32.mrf.mxu2 }
 0x1cc   : > { %v860_v13 = vsel %vm811_vm7, %v842_v22, -1e+30 }
 0x1cd   : > { %v869_v53 = vsel %vm865_vm5, %v860_v13, -inf  ;;  %v788_v20 = vpop.f32.mrf.mxu1 }
 0x1cf   : > { %v723_v41 = vpop.f32.mrf.mxu0 }
 0x1d3   : > { %v845_v39 = vpop.f32.mrf.mxu2 }
 0x1d4   : > { %v861_v37 = vsel %vm812_vm2, %v845_v39, -1e+30 }
 0x1d5   : > { %v870_v60 = vsel %vm865_vm5, %v861_v37, -inf  ;;  %v791_v22 = vpop.f32.mrf.mxu1 }
 0x1d6   : > { %v871_v58 = vmax.f32 %v866_v61, %v870_v60 }
 0x1d7   : > { %v726_v42 = vpop.f32.mrf.mxu0 }
 0x1d8   : > { %v727_v61 = vadd.f32 %v726_v42, %v2267_v28 }
 0x1db   : > { %v848_v24 = vpop.f32.mrf.mxu2 }
 0x1dc   : > { %v2333_v40 = vsel %vm813_vm0, %v848_v24, -1e+30 }
 0x1dd   : > { %v872_v32 = vsel %vm865_vm5, %v2333_v40, -inf }
 0x1de   : > { %v873_v56 = vmax.f32 %v867_v49, %v872_v32 }
 0x1e0   : > { %v878_v3 = vmax.f32 %v871_v58, %v873_v56  ;;  %v724_v58 = vadd.f32 %v723_v41, %v2267_v28 }
 0x1e3   : > { %v851_v59 = vpop.f32.mrf.mxu2 }
 0x1e4   : > { %v863_v12 = vsel %vm814_vm3, %v851_v59, -1e+30 }
 0x1e5   : > { %v874_v44 = vsel %vm865_vm5, %v863_v12, -inf }
 0x1e6   : > { %v875_v17 = vmax.f32 %v868_v4, %v874_v44 }
 0x1eb   : > { %v854_v14 = vpop.f32.mrf.mxu2 }
 0x1ec   : > { %v864_v15 = vsel %vm815_vm8, %v854_v14, -1e+30 }
 0x1ed   : > { %v876_v16 = vsel %vm865_vm5, %v864_v15, -inf }
 0x1ee   : > { %v877_v5 = vmax.f32 %v869_v53, %v876_v16 }
 0x1f0   : > { %v879_v18 = vmax.f32 %v875_v17, %v877_v5  ;;  %v792_v17 = vadd.f32 %v791_v22, %v727_v61 }
 0x1f2   : > { %v880_v19 = vmax.f32 %v878_v3, %v879_v18 }
 0x1f3   : > { %v2377_v38 = vpop.f32.mrf.mxu2 }
 0x1f4   : > { %v881_v54 = vrot.slane %v880_v19, 4 }
 0x1f6   : > { %v882_v57 = vmax.f32 %v880_v19, %v881_v54  ;;  %v721_v54 = vadd.f32 %v720_v11, %v2267_v28 }
 0x1f8   : > { %v883_v0 = vrot.slane %v882_v57, 2 }
 0x1fa   : > { %v884_v7 = vmax.f32 %v882_v57, %v883_v0  ;;  %v789_v0 = vadd.f32 %v788_v20, %v724_v58 }
 0x1fb   : > { %v2379_v62 = vpop.f32.mrf.mxu2 }
 0x1fc   : > { %v885_v21 = vrot.slane %v884_v7, 1 }
 0x1fe   : > { %v886_v63 = vmax.f32 %v884_v7, %v885_v21  ;;  %v718_v21 = vadd.f32 %v2335_v47, %v2267_v28  ;;  %v2421_v47 = vsel %vm808_vm4, %v2377_v38, -1e+30 }
 0x200   : > { %v887_v34 = vsub.f32 %v857_v55, %v886_v63  ;;  %v888_v2 = vsub.f32 %v858_v30, %v886_v63  ;;  %v889_v8 = vsub.f32 %v859_v48, %v886_v63  ;;  %v890_v9 = vsub.f32 %v860_v13, %v886_v63  ;;  %v729_v55 = vpop.f32.mrf.mxu0 }
 0x201   : > { %v891_v39 = vsub.f32 %v861_v37, %v886_v63  ;;  %v892_v32 = vsub.f32 %v2333_v40, %v886_v63  ;;  %v893_v44 = vsub.f32 %v863_v12, %v886_v63  ;;  %v894_v56 = vsub.f32 %v864_v15, %v886_v63  ;;  %v794_v37 = vpop.f32.mrf.mxu1 }
 0x202   : > { %v895_v10 = vmul.f32 1.442695, %v887_v34  ;;  %v897_v24 = vmul.f32 1.442695, %v888_v2  ;;  %v899_v59 = vmul.f32 1.442695, %v889_v8  ;;  %v730_v48 = vadd.f32 %v729_v55, %v2267_v28 }
 0x203   : > { %v901_v49 = vmul.f32 1.442695, %v890_v9  ;;  %v2382_v60 = vpop.f32.mrf.mxu2  ;;  %v903_v14 = vmul.f32 1.442695, %v891_v39  ;;  %v905_v30 = vmul.f32 1.442695, %v892_v32  ;;  %v786_v63 = vadd.f32 %v785_v6, %v721_v54 }
 0x204   : > { %1501 = vpow2.f32 %v895_v10  ;;  %v907_v13 = vmul.f32 1.442695, %v893_v44  ;;  %v795_v40 = vadd.f32 %v794_v37, %v730_v48  ;;  %v909_v53 = vmul.f32 1.442695, %v894_v56 }
 0x205   : > { %1503 = vpow2.f32 %v897_v24  ;;  %v715_v2 = vadd.f32 %v2295_v33, %v2267_v28  ;;  %v783_v20 = vadd.f32 %v2352_v31, %v718_v21  ;;  %v709_v6 = vadd.f32 %v2285_v23, %v2267_v28 }
 0x206   : > { %1505 = vpow2.f32 %v899_v59  ;;  %1196 = vmatpush.msra.mxu3 %v795_v40  ;;  %v712_v9 = vadd.f32 %v2289_v45, %v2267_v28  ;;  %v1076_v24 = vsel %vm865_vm5, %v2421_v47, -inf  ;;  %v1070_v27 = vsel %vm810_vm6, %v2382_v60, -1e+30 }
 0x207   : > { %1507 = vpow2.f32 %v901_v49  ;;  %v780_v39 = vadd.f32 %v2300_v52, %v715_v2  ;;  %v774_v23 = vadd.f32 %v2287_v1, %v709_v6  ;;  %v1069_v49 = vsel %vm809_vm1, %v2379_v62, -1e+30 }
 0x208   : > { %1509 = vpow2.f32 %v903_v14  ;;  %1197 = vmatpush.msra.mxu3 %v792_v17  ;;  %v777_v38 = vadd.f32 %v2291_v46, %v712_v9  ;;  %v1078_v58 = vsel %vm865_vm5, %v1070_v27, -inf }
 0x209   : > { %1511 = vpow2.f32 %v905_v30  ;;  %v1077_v30 = vsel %vm865_vm5, %v1069_v49, -inf }
 0x20a   : > { %v2386_v4 = vpop.eup %1501  ;;  %1513 = vpow2.f32 %v907_v13  ;;  %1198 = vmatpush.msra.mxu3 %v789_v0 }
 0x20b   : > { %v2388_v16 = vpop.eup %1503  ;;  %v911_v12 = vsel %vm865_vm5, %v2386_v4, 0.0  ;;  %v2392_v15 = vpop.f32.mrf.mxu2  ;;  %1515 = vpow2.f32 %v909_v53 }
 0x20c   : > { %v2395_v5 = vpop.eup %1505  ;;  %v912_v3 = vsel %vm865_vm5, %v2388_v16, 0.0  ;;  %1199 = vmatpush.msra.mxu3 %v786_v63 }
 0x20d   : > { %v2399_v18 = vpop.eup %1507  ;;  %v913_v19 = vadd.f32 %v912_v3, %v911_v12  ;;  %v914_v57 = vsel %vm865_vm5, %v2395_v5, 0.0 }
 0x20e   : > { %v2404_v7 = vpop.eup %1509  ;;  %v916_v42 = vsel %vm865_vm5, %v2399_v18, 0.0  ;;  %1200 = vmatpush.msra.mxu3 %v783_v20 }
 0x20f   : > { %v915_v41 = vadd.f32 %v914_v57, %v913_v19  ;;  %v2410_v34 = vpop.eup %1511  ;;  %v918_v8 = vsel %vm865_vm5, %v2404_v7, 0.0  ;;  %v1071_v19 = vsel %vm811_vm7, %v2392_v15, -1e+30 }
 0x210   : > { %v2427_v22 = vpop.eup %1513  ;;  %v920_v10 = vsel %vm865_vm5, %v2410_v34, 0.0  ;;  %1201 = vmatpush.msra.mxu3 %v780_v39  ;;  %v1079_v43 = vsel %vm865_vm5, %v1071_v19, -inf }
 0x211   : > { %v917_v11 = vadd.f32 %v916_v42, %v915_v41  ;;  %v2439_v28 = vpop.eup %1515  ;;  %v922_v59 = vsel %vm865_vm5, %v2427_v22, 0.0 }
 0x212   : > { %v924_v1 = vsel %vm865_vm5, %v2439_v28, 0.0  ;;  %1202 = vmatpush.msra.mxu3 %v777_v38 }
 0x213   : > { %v919_v33 = vadd.f32 %v918_v8, %v917_v11  ;;  %v1056_v31 = vpop.f32.mrf.mxu2 }
 0x214   : > { %v2435_v25 = vsel %vm812_vm2, %v1056_v31, -1e+30  ;;  %1203 = vmatpush.msra.mxu3 %v774_v23 }
 0x215   : > { %v921_v45 = vadd.f32 %v920_v10, %v919_v33  ;;  %v1080_v52 = vsel %vm865_vm5, %v2435_v25, -inf }
 0x216   : > { %v1081_v35 = vmax.f32 %v1076_v24, %v1080_v52 }
 0x217   : > { %v923_v32 = vadd.f32 %v922_v59, %v921_v45 }
 0x219   : > { %v925_v46 = vadd.f32 %v924_v1, %v923_v32 }
 0x21b   : > { %v926_v44 = vrot.slane %v925_v46, 4  ;;  %v1059_v14 = vpop.f32.mrf.mxu2 }
 0x21c   : > { %v2456_v56 = vsel %vm813_vm0, %v1059_v14, -1e+30 }
 0x21d   : > { %v927_v55 = vadd.f32 %v926_v44, %v925_v46  ;;  %v1082_v48 = vsel %vm865_vm5, %v2456_v56, -inf }
 0x21e   : > { %v1083_v37 = vmax.f32 %v1077_v30, %v1082_v48 }
 0x21f   : > { %v928_v13 = vrot.slane %v927_v55, 2 }
 0x220   : > { %v1088_v61 = vmax.f32 %v1081_v35, %v1083_v37 }
 0x221   : > { %v929_v40 = vadd.f32 %v928_v13, %v927_v55 }
 0x223   : > { %v930_v62 = vrot.slane %v929_v40, 1  ;;  %v1062_v53 = vpop.f32.mrf.mxu2 }
 0x224   : > { %v1074_v51 = vsel %vm814_vm3, %v1062_v53, -1e+30 }
 0x225   : > { %v931_v12 = vadd.f32 %v930_v62, %v929_v40  ;;  %v1084_v17 = vsel %vm865_vm5, %v1074_v51, -inf }
 0x226   : > { %v1085_v3 = vmax.f32 %v1078_v58, %v1084_v17 }
 0x227   : > { %1517 = vrcp.f32 %v931_v12  ;;  %v943_v42 = vand.u32 2147483648, %v931_v12  ;;  %v941_v29 = vand.u32 2147483647, %v931_v12  ;;  %vm937_vm10 = vweird.f32 %v931_v12 }
 0x229   : > { %v944_v26 = vor.u32 1.1754944e-38, %v943_v42  ;;  %vm942_vm12 = vcmp.eq.f32.partialorder %v941_v29, 8.507059e+37 }
 0x22b   : > { %v1065_v50 = vpop.f32.mrf.mxu2 }
 0x22c   : > { %v1075_v60 = vsel %vm815_vm8, %v1065_v50, -1e+30 }
 0x22d   : > { %v1518_v54 = vpop.eup %1517  ;;  %v1086_v57 = vsel %vm865_vm5, %v1075_v60, -inf }
 0x22e   : > { %v933_v0 = vmul.f32 %v1518_v54, %v931_v12  ;;  %v1087_v41 = vmax.f32 %v1079_v43, %v1086_v57  ;;  %vm938_vm9 = vweird.f32 %v1518_v54 }
 0x22f   : > { %vm939_vm11 = vmor %vm937_vm10, %vm938_vm9 }
 0x230   : > { %v934_v21 = vsub.f32 1.0, %v933_v0  ;;  %v1089_v63 = vmax.f32 %v1085_v3, %v1087_v41 }
 0x232   : > { %v935_v11 = vmul.f32 %v1518_v54, %v934_v21  ;;  %v1090_v2 = vmax.f32 %v1088_v61, %v1089_v63 }
 0x234   : > { %v1091_v15 = vrot.slane %v1090_v2, 4  ;;  %v936_v20 = vadd.f32 %v1518_v54, %v935_v11 }
 0x236   : > { %v1092_v36 = vmax.f32 %v1090_v2, %v1091_v15  ;;  %v940_v8 = vsel %vm939_vm11, %v1518_v54, %v936_v20 }
 0x237   : > { %v2479_v6 = vsel %vm942_vm12, %v944_v26, %v940_v8 }
 0x238   : > { %v1093_v9 = vrot.slane %v1092_v36, 2  ;;  %v946_v33 = vmul.f32 %v2386_v4, %v2479_v6  ;;  %v947_v23 = vmul.f32 %v2388_v16, %v2479_v6  ;;  %v951_v11 = vmul.f32 %v2410_v34, %v2479_v6 }
 0x239   : > { %v952_v20 = vmul.f32 %v2427_v22, %v2479_v6  ;;  %v953_v8 = vmul.f32 %v2439_v28, %v2479_v6 }
 0x23a   : > { %v1094_v31 = vmax.f32 %v1092_v36, %v1093_v9  ;;  %1382 = vmatmul.msk.f32.vlgmr.msrb.gmra.mxu3 %vm865_vm5, %v946_v33 }
 0x23c   : > { %v1095_v39 = vrot.slane %v1094_v31, 1 }
 0x23e   : > { %v1096_v10 = vmax.f32 %v1094_v31, %v1095_v39 }
 0x240   : > { %v1097_v38 = vsub.f32 %v2421_v47, %v1096_v10  ;;  %v1098_v45 = vsub.f32 %v1069_v49, %v1096_v10  ;;  %v1099_v24 = vsub.f32 %v1070_v27, %v1096_v10  ;;  %v1100_v52 = vsub.f32 %v1071_v19, %v1096_v10 }
 0x241   : > { %v1101_v59 = vsub.f32 %v2435_v25, %v1096_v10  ;;  %v1102_v35 = vsub.f32 %v2456_v56, %v1096_v10  ;;  %v1103_v32 = vsub.f32 %v1074_v51, %v1096_v10  ;;  %v1104_v1 = vsub.f32 %v1075_v60, %v1096_v10 }
 0x242   : > { %v1105_v4 = vmul.f32 1.442695, %v1097_v38  ;;  %v1107_v46 = vmul.f32 1.442695, %v1098_v45  ;;  %v1109_v44 = vmul.f32 1.442695, %v1099_v24  ;;  %1383 = vmatmul.msk.f32.gmra.mxu3 %vm865_vm5, %v947_v23  ;;  %v948_v49 = vmul.f32 %v2395_v5, %v2479_v6 }
 0x243   : > { %v1111_v14 = vmul.f32 1.442695, %v1100_v52  ;;  %v1113_v16 = vmul.f32 1.442695, %v1101_v59  ;;  %v1115_v47 = vmul.f32 1.442695, %v1102_v35  ;;  %v949_v51 = vmul.f32 %v2399_v18, %v2479_v6 }
 0x244   : > { %1519 = vpow2.f32 %v1105_v4  ;;  %v1117_v25 = vmul.f32 1.442695, %v1103_v32  ;;  %v1119_v30 = vmul.f32 1.442695, %v1104_v1  ;;  %v950_v18 = vmul.f32 %v2404_v7, %v2479_v6 }
 0x245   : > { %1521 = vpow2.f32 %v1107_v46 }
 0x246   : > { %1523 = vpow2.f32 %v1109_v44 }
 0x247   : > { %1525 = vpow2.f32 %v1111_v14 }
 0x248   : > { %1527 = vpow2.f32 %v1113_v16 }
 0x249   : > { %1529 = vpow2.f32 %v1115_v47 }
 0x24a   : > { %v1520_v56 = vpop.eup %1519  ;;  %1384 = vmatmul.msk.f32.gmra.mxu3 %vm865_vm5, %v948_v49  ;;  %1531 = vpow2.f32 %v1117_v25 }
 0x24b   : > { %v1522_v55 = vpop.eup %1521  ;;  %v1121_v48 = vsel %vm865_vm5, %v1520_v56, 0.0  ;;  %1533 = vpow2.f32 %v1119_v30 }
 0x24c   : > { %v1524_v37 = vpop.eup %1523  ;;  %v1122_v13 = vsel %vm865_vm5, %v1522_v55, 0.0 }
 0x24d   : > { %v1526_v61 = vpop.eup %1525  ;;  %v1123_v40 = vadd.f32 %v1122_v13, %v1121_v48  ;;  %v1124_v27 = vsel %vm865_vm5, %v1524_v37, 0.0 }
 0x24e   : > { %v1528_v62 = vpop.eup %1527  ;;  %v1126_v53 = vsel %vm865_vm5, %v1526_v61, 0.0 }
 0x24f   : > { %v1125_v5 = vadd.f32 %v1124_v27, %v1123_v40  ;;  %v1530_v12 = vpop.eup %1529  ;;  %v1128_v17 = vsel %vm865_vm5, %v1528_v62, 0.0 }
 0x250   : > { %v1532_v3 = vpop.eup %1531  ;;  %v1130_v50 = vsel %vm865_vm5, %v1530_v12, 0.0 }
 0x251   : > { %v1127_v58 = vadd.f32 %v1126_v53, %v1125_v5  ;;  %v1534_v60 = vpop.eup %1533  ;;  %v1132_v43 = vsel %vm865_vm5, %v1532_v3, 0.0 }
 0x252   : > { %1385 = vmatmul.msk.f32.gmra.mxu3 %vm865_vm5, %v949_v51  ;;  %v1134_v0 = vsel %vm865_vm5, %v1534_v60, 0.0 }
 0x253   : > { %v1129_v19 = vadd.f32 %v1128_v17, %v1127_v58 }
 0x255   : > { %v1131_v54 = vadd.f32 %v1130_v50, %v1129_v19 }
 0x257   : > { %v1133_v57 = vadd.f32 %v1132_v43, %v1131_v54 }
 0x259   : > { %v1135_v41 = vadd.f32 %v1134_v0, %v1133_v57 }
 0x25a   : > { %1386 = vmatmul.msk.f32.gmra.mxu3 %vm865_vm5, %v950_v18 }
 0x25b   : > { %v1136_v21 = vrot.slane %v1135_v41, 4 }
 0x25d   : > { %v1137_v63 = vadd.f32 %v1136_v21, %v1135_v41 }
 0x25f   : > { %v1138_v42 = vrot.slane %v1137_v63, 2 }
 0x261   : > { %v1139_v2 = vadd.f32 %v1138_v42, %v1137_v63 }
 0x262   : > { %1387 = vmatmul.msk.f32.gmra.mxu3 %vm865_vm5, %v951_v11 }
 0x263   : > { %v1140_v29 = vrot.slane %v1139_v2, 1 }
 0x265   : > { %v1141_v15 = vadd.f32 %v1140_v29, %v1139_v2 }
 0x267   : > { %1535 = vrcp.f32 %v1141_v15  ;;  %v1153_v9 = vand.u32 2147483648, %v1141_v15  ;;  %v1151_v34 = vand.u32 2147483647, %v1141_v15  ;;  %vm1147_vm14 = vweird.f32 %v1141_v15 }
 0x269   : > { %v1154_v39 = vor.u32 1.1754944e-38, %v1153_v9  ;;  %vm1152_vm0 = vcmp.eq.f32.partialorder %v1151_v34, 8.507059e+37 }
 0x26a   : > { %1388 = vmatmul.msk.f32.gmra.mxu3 %vm865_vm5, %v952_v20 }
 0x26d   : > { %v1536_v7 = vpop.eup %1535 }
 0x26e   : > { %v1143_v26 = vmul.f32 %v1536_v7, %v1141_v15  ;;  %vm1148_vm13 = vweird.f32 %v1536_v7 }
 0x26f   : > { %vm1149_vm15 = vmor %vm1147_vm14, %vm1148_vm13 }
 0x270   : > { %v1144_v36 = vsub.f32 1.0, %v1143_v26 }
 0x272   : > { %v1145_v33 = vmul.f32 %v1536_v7, %v1144_v36  ;;  %1389 = vmatmul.msk.f32.gmra.mxu3 %vm865_vm5, %v953_v8 }
 0x274   : > { %v1146_v31 = vadd.f32 %v1536_v7, %v1145_v33 }
 0x276   : > { %v1150_v10 = vsel %vm1149_vm15, %v1536_v7, %v1146_v31 }
 0x277   : > { %v1155_v22 = vsel %vm1152_vm0, %v1154_v39, %v1150_v10 }
 0x278   : > { %v1156_v23 = vmul.f32 %v1520_v56, %v1155_v22  ;;  %v1157_v38 = vmul.f32 %v1522_v55, %v1155_v22  ;;  %v1158_v45 = vmul.f32 %v1524_v37, %v1155_v22  ;;  %v1159_v24 = vmul.f32 %v1526_v61, %v1155_v22 }
 0x279   : > { %v1160_v52 = vmul.f32 %v1528_v62, %v1155_v22  ;;  %v1161_v28 = vmul.f32 %v1530_v12, %v1155_v22  ;;  %v1162_v6 = vmul.f32 %v1532_v3, %v1155_v22  ;;  %v1163_v59 = vmul.f32 %v1534_v60, %v1155_v22 }
 0x27a   : > { %1390 = vmatmul.msk.f32.vlgmr.msra.gmra.mxu3 %vm865_vm5, %v1156_v23 }
 0x282   : > { %1391 = vmatmul.msk.f32.gmra.mxu3 %vm865_vm5, %v1157_v38 }
 0x28a   : > { %1392 = vmatmul.msk.f32.gmra.mxu3 %vm865_vm5, %v1158_v45 }
 0x292   : > { %1393 = vmatmul.msk.f32.gmra.mxu3 %vm865_vm5, %v1159_v24 }
 0x29a   : > { %1394 = vmatmul.msk.f32.gmra.mxu3 %vm865_vm5, %v1160_v52 }
 0x2a2   : > { %1395 = vmatmul.msk.f32.gmra.mxu3 %vm865_vm5, %v1161_v28 }
 0x2aa   : > { %1396 = vmatmul.msk.f32.gmra.mxu3 %vm865_vm5, %v1162_v6 }
 0x2b2   : > { %1397 = vmatmul.msk.f32.gmra.mxu3 %vm865_vm5, %v1163_v59 }
 0x2bd   : > { %v995_v35 = vpop.f32.mrf.mxu3 }
 0x2be   : > { %1019 = vst [vmem:[%s2525_s19] sm:$0xff] %v995_v35 }
 0x2c5   : > { %v998_v32 = vpop.f32.mrf.mxu3 }
 0x2c6   : > { %1020 = vst [vmem:[%s2525_s19 + $0x8] sm:$0xff] %v998_v32 }
 0x2cd   : > { %v1001_v1 = vpop.f32.mrf.mxu3 }
 0x2ce   : > { %1021 = vst [vmem:[%s2525_s19 + $0x10] sm:$0xff] %v1001_v1 }
 0x2d5   : > { %v1004_v4 = vpop.f32.mrf.mxu3 }
 0x2d6   : > { %1022 = vst [vmem:[%s2525_s19 + $0x18] sm:$0xff] %v1004_v4 }
 0x2dd   : > { %v1007_v46 = vpop.f32.mrf.mxu3 }
 0x2de   : > { %1023 = vst [vmem:[%s2525_s19 + $0x20] sm:$0xff] %v1007_v46 }
 0x2e5   : > { %v1010_v44 = vpop.f32.mrf.mxu3 }
 0x2e6   : > { %1024 = vst [vmem:[%s2525_s19 + $0x28] sm:$0xff] %v1010_v44 }
 0x2ed   : > { %v1013_v14 = vpop.f32.mrf.mxu3 }
 0x2ee   : > { %1025 = vst [vmem:[%s2525_s19 + $0x30] sm:$0xff] %v1013_v14 }
 0x2f5   : > { %v1016_v16 = vpop.f32.mrf.mxu3 }
 0x2f6   : > { %1026 = vst [vmem:[%s2525_s19 + $0x38] sm:$0xff] %v1016_v16 }
 0x2fd   : > { %v1205_v47 = vpop.f32.mrf.mxu3 }
 0x2fe   : > { %1398 = vst [vmem:[%s2525_s19 + $0x40] sm:$0xff] %v1205_v47 }
 0x305   : > { %v1208_v49 = vpop.f32.mrf.mxu3 }
 0x306   : > { %1399 = vst [vmem:[%s2525_s19 + $0x48] sm:$0xff] %v1208_v49 }
 0x30d   : > { %v1211_v25 = vpop.f32.mrf.mxu3 }
 0x30e   : > { %1400 = vst [vmem:[%s2525_s19 + $0x50] sm:$0xff] %v1211_v25 }
 0x315   : > { %v1214_v56 = vpop.f32.mrf.mxu3 }
 0x316   : > { %1401 = vst [vmem:[%s2525_s19 + $0x58] sm:$0xff] %v1214_v56 }
 0x31d   : > { %v1217_v55 = vpop.f32.mrf.mxu3 }
 0x31e   : > { %1402 = vst [vmem:[%s2525_s19 + $0x60] sm:$0xff] %v1217_v55 }
 0x325   : > { %v1220_v30 = vpop.f32.mrf.mxu3 }
 0x326   : > { %1403 = vst [vmem:[%s2525_s19 + $0x68] sm:$0xff] %v1220_v30 }
 0x32d   : > { %v1223_v48 = vpop.f32.mrf.mxu3 }
 0x32e   : > { %1404 = vst [vmem:[%s2525_s19 + $0x70] sm:$0xff] %v1223_v48 }
 0x335   : > { %v1226_v37 = vpop.f32.mrf.mxu3 }
 0x336   : > { %1405 = vst [vmem:[%s2525_s19 + $0x78] sm:$0xff] %v1226_v37 }
 0x337   : > { %1654 = shalt.err (!%p1651_p13)
}
 0x338   : > { %s1721_s26 = smov 128   ;;  %s1722_s30 = smov 256  }
 0x339   : > { %s1723_s1 = smov 8  }
 0x33a   : > { %1423 = dma.vmem_to_hbm [thread:$0]  (%p1826_p0), %s1254_s7, 2048, %s1256_s8, %s1239_s9, %s1721_s26, %s1722_s30, %s1723_s1  }
 0x33b PF: > { %s1270_s6 = sand.u32 1, %s1693_s12   ;;  %p1437_p4 = pnand %p1377_p3, %p1830_p2 }
 0x33c   : > { %s1271_s10 = scalar_lea.sflag [#allocation4], %s1270_s6 }
 0x33d   : > { %p1438_p5 = pneg %p1437_p4 }
 0x33f   : > { %1688 = dma.done.wait (%p1438_p5), %s1271_s10, 2048  }
 0x340   : > { %1690 = vsyncadd (%p1438_p5), %s1271_s10, 4294965248  ;;  %s20_s17 = sadd.s32 1, %s1713_s17   ;;  %s2595_s12 = smov %s1697_s13 }
 0x341   : > { %p17_p1 = scmp.ge.s32.totalorder %s20_s17, 4   ;;  %s2596_s13 = smov %s1701_s14 }
 0x342   : > { %s2597_s14 = smov %s1792_s24  ;;  %s2598_s15 = smov %s1709_s16 }
 0x343   : > { %s2599_s16 = smov %s2601_s18  ;;  %19 = sbr.rel (!%p17_p1) target bundleno = 10 (0xa), region = 95 }
 0x348   :  { %1277 = vsyncpa [#allocation3], 1 }
 0x349   :  { %1279 = vsyncpa [#allocation3 + $0x1], 1 }
 0x34a   :  { %1280 = vsyncpa [#allocation6], 1 }
 0x34b   :  { %1282 = vsyncpa [#allocation6 + $0x1], 1 }
 0x34c   :  { %1283 = vsyncpa [#allocation4], 1 }
 0x34d   :  { %1285 = vsyncpa [#allocation4 + $0x1], 1 }

</bundles_post_ra>
